<compile_context>
chip_gen: v7x
topology: tpu7x:2x2x1
jax: 0.10.0
libtpu: 0.0.40
codegen_flags: <defaults>
</compile_context>

<pallas_src>
import jax
import jax.numpy as jnp
from jax import lax
from jax.experimental import pallas as pl
from jax.experimental.pallas import tpu as pltpu

# ------------------------- problem sizes (small, deterministic) ----------------------
B = 2          # batch of images / objects
R = 8          # rays per image
S = 16         # samples per ray
D_CODE = 32    # latent code dim (shape / texture)
HID = 128      # MLP hidden width

HPAMS = {"arch": "codenerf", "loss_occ_coef": 0.01, "loss_code_coef": 0.01}
LOSS_OCC_COEF = HPAMS["loss_occ_coef"]
LOSS_CODE_COEF = HPAMS["loss_code_coef"]


# ============================ fused per-image kernel ==================================
def _parallel_model_kernel(
        xyz_ref, vd_ref, sc_ref, tc_ref, dlt_ref, tgt_ref, occ_ref,
        w1x_ref, w1c_ref, b1_ref, w2_ref, b2_ref, wsig_ref, bsig_ref,
        w3a_ref, w3bv_ref, w3bc_ref, b3_ref, wrgb_ref, brgb_ref,
        out_ref):
    f32 = jnp.float32

    def mm(a, w_ref):
        # activations cast to bf16 at the MXU; weights already bf16; f32 accumulate.
        return jnp.dot(a.astype(jnp.bfloat16), w_ref[...], preferred_element_type=f32)

    xyz = xyz_ref[0]            # (R*S, 3)   sample-major point order (p = s*R + r)
    vd = vd_ref[0]              # (R*S, 3)
    sc = sc_ref[0]              # (1, D)
    tc = tc_ref[0]              # (1, D)
    dlt = dlt_ref[0]            # (R*S, 1)   precomputed deltas (last sample = 1e10)
    tgt = tgt_ref[0]            # (R, 3)
    occ = occ_ref[0]            # (R, 1)

    n_rays = occ.shape[0]
    n_samp = xyz.shape[0] // n_rays

    # ---- per-image latent-code contributions: a single (1, H) broadcast bias-add ----
    code1 = mm(sc, w1c_ref)                                        # (1, H)
    code3 = mm(tc, w3bc_ref)                                       # (1, H)

    # ---- conditional NeRF MLP (point-major, MXU bf16 / f32 acc) ----
    h1 = jnp.maximum(mm(xyz, w1x_ref) + code1 + b1_ref[...], 0.0)          # (RS, H)
    h2 = jnp.maximum(mm(h1, w2_ref) + b2_ref[...], 0.0)                    # (RS, H)
    sigma = jnp.maximum(mm(h2, wsig_ref) + bsig_ref[...], 0.0)             # (RS, 1) f32
    h3 = jnp.maximum(mm(h2, w3a_ref) + mm(vd, w3bv_ref) + code3
                     + b3_ref[...], 0.0)                                   # (RS, H)
    rgb = jax.nn.sigmoid(mm(h3, wrgb_ref) + brgb_ref[...])                 # (RS, 3) f32

    # ---- volume rendering: O(N) sample-major accumulation (exclusive transmittance) ----
    # rows [s*R : (s+1)*R] hold all rays at depth s -> 8-sublane-aligned static slices.
    excl = jnp.zeros((n_rays, 1), f32)       # running sum of sigma*delta (f32; 1e10 term excluded)
    ray_rgb = jnp.zeros((n_rays, 3), f32)
    acc_tr = jnp.ones((n_rays, 1), f32)
    for s in range(n_samp):
        lo = s * n_rays
        sd_s = sigma[lo:lo + n_rays, :] * dlt[lo:lo + n_rays, :]           # (R, 1) f32
        t_s = jnp.exp(-excl)                                               # exclusive transmittance
        w_s = (1.0 - jnp.exp(-sd_s)) * t_s                                 # (R, 1)
        ray_rgb = ray_rgb + w_s * rgb[lo:lo + n_rays, :]                   # (R, 3)
        if s == n_samp - 1:
            acc_tr = t_s                                                   # T at last sample
        else:
            excl = excl + sd_s                                             # keep 1e10*sigma out

    # ---- per-image losses ----
    occ_abs = jnp.abs(occ)                                                 # (R, 1)
    denom = jnp.sum(occ_abs, axis=0, keepdims=True) + 1e-9                 # (1, 1)
    sq = jnp.sum((ray_rgb - tgt) ** 2, axis=1, keepdims=True)              # (R, 1)
    l_rgb = jnp.sum(sq * occ_abs, axis=0, keepdims=True) / denom           # (1, 1)
    l_occ = jnp.sum(jnp.exp(-occ * (0.5 - acc_tr)) * occ_abs,
                    axis=0, keepdims=True) / denom                         # (1, 1)
    l_reg = (jnp.sqrt(jnp.sum(sc * sc, axis=1, keepdims=True))
             + jnp.sqrt(jnp.sum(tc * tc, axis=1, keepdims=True)))          # (1, 1)

    loss_code = 0.0   # 'autorf' not in arch -> image-encoder branch skipped
    l_tot = l_rgb + LOSS_OCC_COEF * l_occ + LOSS_CODE_COEF * loss_code

    # lane-dense per-image row: [loss_rgb, loss_occ, loss_reg, loss_total, 0, ...]
    lane = lax.broadcasted_iota(jnp.int32, out_ref.shape, 2)               # (1, 1, 128)
    out_ref[...] = (jnp.where(lane == 0, l_rgb, 0.0)
                    + jnp.where(lane == 1, l_occ, 0.0)
                    + jnp.where(lane == 2, l_reg, 0.0)
                    + jnp.where(lane == 3, l_tot, 0.0))


# ================================ forward (thin glue) ==================================
def parallel_model_forward(params, img_in_batch, shapecode, texturecode,
                           xyz, viewdir, z_vals, rgb_tgt, occ_pixels):
    (w1x, w1c, b1, w2, b2, wsig, bsig, w3a, w3bv, w3bc, b3, wrgb, brgb) = params
    bf = jnp.bfloat16
    f32 = jnp.float32

    # bf16-resident weights (cast once); biases stay f32.
    weights = (w1x.astype(bf), w1c.astype(bf), b1.astype(f32),
               w2.astype(bf), b2.astype(f32),
               wsig.astype(bf), bsig.astype(f32),
               w3a.astype(bf), w3bv.astype(bf), w3bc.astype(bf), b3.astype(f32),
               wrgb.astype(bf), brgb.astype(f32))

    b = img_in_batch.shape[0]          # batch size only (codenerf arch path)
    r, s = xyz.shape[1], xyz.shape[2]
    rs = r * s

    # Sample-major point ordering per image: row p = s*R + r.
    xyz_sm = xyz.astype(f32).transpose(0, 2, 1, 3).reshape(b, rs, 3)
    vd_sm = viewdir.astype(f32).transpose(0, 2, 1, 3).reshape(b, rs, 3)
    deltas = jnp.concatenate(
        [z_vals[..., 1:] - z_vals[..., :-1],
         jnp.full(z_vals.shape[:-1] + (1,), 1e10, f32)], axis=-1)           # (B, R, S)
    dlt_sm = deltas.astype(f32).transpose(0, 2, 1).reshape(b, rs, 1)
    sc_r = shapecode.astype(f32).reshape(b, 1, -1)
    tc_r = texturecode.astype(f32).reshape(b, 1, -1)
    tgt = rgb_tgt.astype(f32)                                               # (B, R, 3)
    occ = occ_pixels.astype(f32)                                            # (B, R, 1)

    def img_spec(shape):
        nd = len(shape)
        blk = (1,) + tuple(shape[1:])
        return pl.BlockSpec(blk, lambda i, _nd=nd: (i,) + (0,) * (_nd - 1))

    def full_spec(x):
        nd = x.ndim
        return pl.BlockSpec(x.shape, lambda i, _nd=nd: (0,) * _nd)

    in_specs = ([img_spec(xyz_sm.shape), img_spec(vd_sm.shape),
                 img_spec(sc_r.shape), img_spec(tc_r.shape),
                 img_spec(dlt_sm.shape), img_spec(tgt.shape), img_spec(occ.shape)]
                + [full_spec(w) for w in weights])

    # One image per grid step; weights stay resident (constant block index).
    # TODO(synk): at production ray counts, add a second (parallel) ray-tile grid axis
    # and budget per-step VMEM (tile * HID f32 * 2 buffers + bf16 weights < 64 MiB on v7x).
    rows = pl.pallas_call(
        _parallel_model_kernel,
        grid=(b,),
        in_specs=in_specs,
        out_specs=pl.BlockSpec((1, 1, 128), lambda i: (i, 0, 0)),
        out_shape=jax.ShapeDtypeStruct((b, 1, 128), jnp.float32),
        compiler_params=pltpu.CompilerParams(
            dimension_semantics=("parallel",)),
    )(xyz_sm, vd_sm, sc_r, tc_r, dlt_sm, tgt, occ, *weights)

    rows = rows.reshape(b, 128)
    loss_code = 0.0
    mean_rgb = jnp.mean(rows[:, 0])
    mean_occ = jnp.mean(rows[:, 1])
    mean_reg = jnp.mean(rows[:, 2]) + loss_code
    mean_tot = jnp.mean(rows[:, 3])
    return (mean_rgb, mean_occ, mean_reg, mean_tot, shapecode, texturecode)


# ========================= pure-JAX reference (torch semantics) ========================
def reference_forward(params, img_in_batch, shapecode, texturecode,
                      xyz, viewdir, z_vals, rgb_tgt, occ_pixels):
    (w1x, w1c, b1, w2, b2, wsig, bsig, w3a, w3bv, w3bc, b3, wrgb, brgb) = params
    b = img_in_batch.shape[0]
    r, s = xyz.shape[1], xyz.shape[2]
    n = b * r * s

    def mm(x, w):
        return jnp.dot(x.astype(jnp.bfloat16), w.astype(jnp.bfloat16),
                       preferred_element_type=jnp.float32)

    loss_code = 0.0
    xyz_f = xyz.reshape(n, 3)
    vd_f = viewdir.reshape(n, 3)
    sc_rep = jnp.repeat(shapecode, r * s, axis=0)
    tc_rep = jnp.repeat(texturecode, r * s, axis=0)
    xin = jnp.concatenate([xyz_f, sc_rep], axis=-1)
    vt = jnp.concatenate([vd_f, tc_rep], axis=-1)
    w1 = jnp.concatenate([w1x, w1c], axis=0)
    w3b = jnp.concatenate([w3bv, w3bc], axis=0)

    h1 = jax.nn.relu(mm(xin, w1) + b1)
    h2 = jax.nn.relu(mm(h1, w2) + b2)
    sigma = jax.nn.relu(mm(h2, wsig) + bsig)                                 # (N, 1)
    h3 = jax.nn.relu(mm(h2, w3a) + mm(vt, w3b) + b3)
    rgb = jax.nn.sigmoid(mm(h3, wrgb) + brgb)                                # (N, 3)

    sig_b = sigma.reshape(b, r, s)
    rgb_b = rgb.reshape(b, r, s, 3)
    deltas = jnp.concatenate(
        [z_vals[..., 1:] - z_vals[..., :-1],
         jnp.full(z_vals.shape[:-1] + (1,), 1e10, jnp.float32)], axis=-1)
    sd = sig_b * deltas
    alphas = 1.0 - jnp.exp(-sd)
    excl = jnp.concatenate(
        [jnp.zeros_like(sd[..., :1]), jnp.cumsum(sd[..., :-1], axis=-1)], axis=-1)
    t_excl = jnp.exp(-excl)
    weights = alphas * t_excl
    rgb_rays = jnp.sum(weights[..., None] * rgb_b, axis=-2)                  # (B, R, 3)
    acc_trans = t_excl[..., -1]                                              # (B, R)

    occ_abs = jnp.abs(occ_pixels)
    denom = jnp.sum(occ_abs, axis=(-2, -1)) + 1e-9
    l_rgb = jnp.sum((rgb_rays - rgb_tgt) ** 2 * occ_abs, axis=(-2, -1)) / denom
    l_occ = jnp.sum(jnp.exp(-occ_pixels * (0.5 - acc_trans[..., None])) * occ_abs,
                    axis=(-2, -1)) / denom
    l_reg = jnp.linalg.norm(shapecode, axis=-1) + jnp.linalg.norm(texturecode, axis=-1)
    l_tot = l_rgb + HPAMS["loss_occ_coef"] * l_occ + HPAMS["loss_code_coef"] * loss_code
    return (l_rgb.mean(), l_occ.mean(), l_reg.mean() + loss_code, l_tot.mean(),
            shapecode, texturecode)


# ========================================= main =======================================
def _init_params(key):
    ks = jax.random.split(key, 13)

    def w(k, shape, scale=0.1):
        return jax.random.normal(k, shape, jnp.float32) * scale

    return (
        w(ks[0], (3, HID)), w(ks[1], (D_CODE, HID)), w(ks[2], (1, HID)),     # layer 1
        w(ks[3], (HID, HID)), w(ks[4], (1, HID)),                            # layer 2
        w(ks[5], (HID, 1)), w(ks[6], (1, 1)),                                # sigma head
        w(ks[7], (HID, HID)), w(ks[8], (3, HID)), w(ks[9], (D_CODE, HID)),   # layer 3
        w(ks[10], (1, HID)),
        w(ks[11], (HID, 3)), w(ks[12], (1, 3)),                              # rgb head
    )


if __name__ == "__main__":
    root = jax.random.PRNGKey(0)
    kp, k1, k2, k3, k4, k5, k6, k7 = jax.random.split(root, 8)

    params = _init_params(kp)

    img_in = jax.random.normal(k1, (B, 3, 16, 16), jnp.float32)   # NCHW (batch size only)
    shapecode = jax.random.normal(k2, (B, D_CODE), jnp.float32) * 0.5
    texturecode = jax.random.normal(k3, (B, D_CODE), jnp.float32) * 0.5
    xyz = jax.random.normal(k4, (B, R, S, 3), jnp.float32)
    viewdir = jax.random.normal(k5, (B, R, S, 3), jnp.float32)
    z_vals = jnp.broadcast_to(jnp.linspace(0.5, 2.5, S, dtype=jnp.float32), (B, R, S))
    rgb_tgt = jax.random.uniform(k6, (B, R, 3), jnp.float32)
    occ = jnp.where(jax.random.uniform(k7, (B, R, 1)) > 0.3, 1.0, -1.0).astype(jnp.float32)

    fwd = jax.jit(parallel_model_forward)
    out = jax.block_until_ready(
        fwd(params, img_in, shapecode, texturecode, xyz, viewdir, z_vals, rgb_tgt, occ))

    ref = reference_forward(params, img_in, shapecode, texturecode,
                            xyz, viewdir, z_vals, rgb_tgt, occ)

    for got, exp in zip(out[:4], ref[:4]):
        assert bool(jnp.isfinite(got)), f"non-finite loss: {got}"
        assert jnp.allclose(got, exp, rtol=2e-2, atol=1e-3), (got, exp)
    assert jnp.allclose(out[4], shapecode) and jnp.allclose(out[5], texturecode)

    print("KERNEL_OK")
</pallas_src>

<mosaic_0001>
module attributes {stable_mosaic.version = 11 : i64} {
  func.func @_parallel_model_kernel(%arg0: i32, %arg1: memref<1x128x3xf32, #tpu.memory_space<vmem>>, %arg2: memref<1x128x3xf32, #tpu.memory_space<vmem>>, %arg3: memref<1x1x32xf32, #tpu.memory_space<vmem>>, %arg4: memref<1x1x32xf32, #tpu.memory_space<vmem>>, %arg5: memref<1x128x1xf32, #tpu.memory_space<vmem>>, %arg6: memref<1x8x3xf32, #tpu.memory_space<vmem>>, %arg7: memref<1x8x1xf32, #tpu.memory_space<vmem>>, %arg8: memref<3x128xbf16, #tpu.memory_space<vmem>>, %arg9: memref<32x128xbf16, #tpu.memory_space<vmem>>, %arg10: memref<1x128xf32, #tpu.memory_space<vmem>>, %arg11: memref<128x128xbf16, #tpu.memory_space<vmem>>, %arg12: memref<1x128xf32, #tpu.memory_space<vmem>>, %arg13: memref<128x1xbf16, #tpu.memory_space<vmem>>, %arg14: memref<1x1xf32, #tpu.memory_space<vmem>>, %arg15: memref<128x128xbf16, #tpu.memory_space<vmem>>, %arg16: memref<3x128xbf16, #tpu.memory_space<vmem>>, %arg17: memref<32x128xbf16, #tpu.memory_space<vmem>>, %arg18: memref<1x128xf32, #tpu.memory_space<vmem>>, %arg19: memref<128x3xbf16, #tpu.memory_space<vmem>>, %arg20: memref<1x3xf32, #tpu.memory_space<vmem>>, %arg21: memref<1x1x128xf32, #tpu.memory_space<vmem>>) attributes {dimension_semantics = [#tpu.dimension_semantics<parallel>], iteration_bounds = array<i64: 2>, scalar_prefetch = 0 : i64, scratch_operands = 0 : i64, tpu.core_type = #tpu.core_type<tc>, window_params = [{transform_indices = @transform_0, window_bounds = array<i64: 1, 128, 3>}, {transform_indices = @transform_1, window_bounds = array<i64: 1, 128, 3>}, {transform_indices = @transform_2, window_bounds = array<i64: 1, 1, 32>}, {transform_indices = @transform_3, window_bounds = array<i64: 1, 1, 32>}, {transform_indices = @transform_4, window_bounds = array<i64: 1, 128, 1>}, {transform_indices = @transform_5, window_bounds = array<i64: 1, 8, 3>}, {transform_indices = @transform_6, window_bounds = array<i64: 1, 8, 1>}, {pipeline_mode = #tpu.pipeline_mode<synchronous>, transform_indices = @transform_7, window_bounds = array<i64: 3, 128>}, {pipeline_mode = #tpu.pipeline_mode<synchronous>, transform_indices = @transform_8, window_bounds = array<i64: 32, 128>}, {pipeline_mode = #tpu.pipeline_mode<synchronous>, transform_indices = @transform_9, window_bounds = array<i64: 1, 128>}, {pipeline_mode = #tpu.pipeline_mode<synchronous>, transform_indices = @transform_10, window_bounds = array<i64: 128, 128>}, {pipeline_mode = #tpu.pipeline_mode<synchronous>, transform_indices = @transform_11, window_bounds = array<i64: 1, 128>}, {pipeline_mode = #tpu.pipeline_mode<synchronous>, transform_indices = @transform_12, window_bounds = array<i64: 128, 1>}, {pipeline_mode = #tpu.pipeline_mode<synchronous>, transform_indices = @transform_13, window_bounds = array<i64: 1, 1>}, {pipeline_mode = #tpu.pipeline_mode<synchronous>, transform_indices = @transform_14, window_bounds = array<i64: 128, 128>}, {pipeline_mode = #tpu.pipeline_mode<synchronous>, transform_indices = @transform_15, window_bounds = array<i64: 3, 128>}, {pipeline_mode = #tpu.pipeline_mode<synchronous>, transform_indices = @transform_16, window_bounds = array<i64: 32, 128>}, {pipeline_mode = #tpu.pipeline_mode<synchronous>, transform_indices = @transform_17, window_bounds = array<i64: 1, 128>}, {pipeline_mode = #tpu.pipeline_mode<synchronous>, transform_indices = @transform_18, window_bounds = array<i64: 128, 3>}, {pipeline_mode = #tpu.pipeline_mode<synchronous>, transform_indices = @transform_19, window_bounds = array<i64: 1, 3>}, {transform_indices = @transform_20, window_bounds = array<i64: 1, 1, 128>}]} {
    %c0 = arith.constant 0 : index
    %c0_0 = arith.constant 0 : index
    %c0_1 = arith.constant 0 : index
    %0 = vector.load %arg1[%c0, %c0_0, %c0_1] : memref<1x128x3xf32, #tpu.memory_space<vmem>>, vector<1x128x3xf32>
    %1 = vector.shape_cast %0 : vector<1x128x3xf32> to vector<128x3xf32>
    %c0_2 = arith.constant 0 : index
    %c0_3 = arith.constant 0 : index
    %c0_4 = arith.constant 0 : index
    %2 = vector.load %arg2[%c0_2, %c0_3, %c0_4] : memref<1x128x3xf32, #tpu.memory_space<vmem>>, vector<1x128x3xf32>
    %3 = vector.shape_cast %2 : vector<1x128x3xf32> to vector<128x3xf32>
    %c0_5 = arith.constant 0 : index
    %c0_6 = arith.constant 0 : index
    %c0_7 = arith.constant 0 : index
    %4 = vector.load %arg3[%c0_5, %c0_6, %c0_7] : memref<1x1x32xf32, #tpu.memory_space<vmem>>, vector<1x1x32xf32>
    %5 = vector.shape_cast %4 : vector<1x1x32xf32> to vector<1x32xf32>
    %c0_8 = arith.constant 0 : index
    %c0_9 = arith.constant 0 : index
    %c0_10 = arith.constant 0 : index
    %6 = vector.load %arg4[%c0_8, %c0_9, %c0_10] : memref<1x1x32xf32, #tpu.memory_space<vmem>>, vector<1x1x32xf32>
    %7 = vector.shape_cast %6 : vector<1x1x32xf32> to vector<1x32xf32>
    %c0_11 = arith.constant 0 : index
    %c0_12 = arith.constant 0 : index
    %c0_13 = arith.constant 0 : index
    %8 = vector.load %arg5[%c0_11, %c0_12, %c0_13] : memref<1x128x1xf32, #tpu.memory_space<vmem>>, vector<1x128x1xf32>
    %9 = vector.shape_cast %8 : vector<1x128x1xf32> to vector<128x1xf32>
    %c0_14 = arith.constant 0 : index
    %c0_15 = arith.constant 0 : index
    %c0_16 = arith.constant 0 : index
    %10 = vector.load %arg6[%c0_14, %c0_15, %c0_16] : memref<1x8x3xf32, #tpu.memory_space<vmem>>, vector<1x8x3xf32>
    %11 = vector.shape_cast %10 : vector<1x8x3xf32> to vector<8x3xf32>
    %c0_17 = arith.constant 0 : index
    %c0_18 = arith.constant 0 : index
    %c0_19 = arith.constant 0 : index
    %12 = vector.load %arg7[%c0_17, %c0_18, %c0_19] : memref<1x8x1xf32, #tpu.memory_space<vmem>>, vector<1x8x1xf32>
    %13 = vector.shape_cast %12 : vector<1x8x1xf32> to vector<8x1xf32>
    %14 = arith.truncf %5 : vector<1x32xf32> to vector<1x32xbf16>
    %c0_20 = arith.constant 0 : index
    %c0_21 = arith.constant 0 : index
    %15 = vector.load %arg9[%c0_20, %c0_21] : memref<32x128xbf16, #tpu.memory_space<vmem>>, vector<32x128xbf16>
    %cst = arith.constant dense<0.000000e+00> : vector<1x128xf32>
    %16 = tpu.matmul %14, %15, %cst {dimension_numbers = #tpu.dot_dimension_numbers<[1], [0], [0], [1], [0, 0, 1, 1], [], []>} : vector<1x32xbf16>, vector<32x128xbf16>, vector<1x128xf32> -> vector<1x128xf32>
    %17 = arith.truncf %7 : vector<1x32xf32> to vector<1x32xbf16>
    %c0_22 = arith.constant 0 : index
    %c0_23 = arith.constant 0 : index
    %18 = vector.load %arg17[%c0_22, %c0_23] : memref<32x128xbf16, #tpu.memory_space<vmem>>, vector<32x128xbf16>
    %cst_24 = arith.constant dense<0.000000e+00> : vector<1x128xf32>
    %19 = tpu.matmul %17, %18, %cst_24 {dimension_numbers = #tpu.dot_dimension_numbers<[1], [0], [0], [1], [0, 0, 1, 1], [], []>} : vector<1x32xbf16>, vector<32x128xbf16>, vector<1x128xf32> -> vector<1x128xf32>
    %20 = arith.truncf %1 : vector<128x3xf32> to vector<128x3xbf16>
    %c0_25 = arith.constant 0 : index
    %c0_26 = arith.constant 0 : index
    %21 = vector.load %arg8[%c0_25, %c0_26] : memref<3x128xbf16, #tpu.memory_space<vmem>>, vector<3x128xbf16>
    %cst_27 = arith.constant dense<0.000000e+00> : vector<128x128xf32>
    %22 = tpu.matmul %20, %21, %cst_27 {dimension_numbers = #tpu.dot_dimension_numbers<[1], [0], [0], [1], [0, 0, 1, 1], [], []>} : vector<128x3xbf16>, vector<3x128xbf16>, vector<128x128xf32> -> vector<128x128xf32>
    %23 = vector.broadcast %16 : vector<1x128xf32> to vector<128x128xf32>
    %24 = arith.addf %22, %23 : vector<128x128xf32>
    %c0_28 = arith.constant 0 : index
    %c0_29 = arith.constant 0 : index
    %25 = vector.load %arg10[%c0_28, %c0_29] : memref<1x128xf32, #tpu.memory_space<vmem>>, vector<1x128xf32>
    %26 = vector.broadcast %25 : vector<1x128xf32> to vector<128x128xf32>
    %27 = arith.addf %24, %26 : vector<128x128xf32>
    %cst_30 = arith.constant 0.000000e+00 : f32
    %28 = vector.broadcast %cst_30 : f32 to vector<128x128xf32>
    %29 = arith.maximumf %27, %28 : vector<128x128xf32>
    %30 = arith.truncf %29 : vector<128x128xf32> to vector<128x128xbf16>
    %c0_31 = arith.constant 0 : index
    %c0_32 = arith.constant 0 : index
    %31 = vector.load %arg11[%c0_31, %c0_32] : memref<128x128xbf16, #tpu.memory_space<vmem>>, vector<128x128xbf16>
    %cst_33 = arith.constant dense<0.000000e+00> : vector<128x128xf32>
    %32 = tpu.matmul %30, %31, %cst_33 {dimension_numbers = #tpu.dot_dimension_numbers<[1], [0], [0], [1], [0, 0, 1, 1], [], []>} : vector<128x128xbf16>, vector<128x128xbf16>, vector<128x128xf32> -> vector<128x128xf32>
    %c0_34 = arith.constant 0 : index
    %c0_35 = arith.constant 0 : index
    %33 = vector.load %arg12[%c0_34, %c0_35] : memref<1x128xf32, #tpu.memory_space<vmem>>, vector<1x128xf32>
    %34 = vector.broadcast %33 : vector<1x128xf32> to vector<128x128xf32>
    %35 = arith.addf %32, %34 : vector<128x128xf32>
    %cst_36 = arith.constant 0.000000e+00 : f32
    %36 = vector.broadcast %cst_36 : f32 to vector<128x128xf32>
    %37 = arith.maximumf %35, %36 : vector<128x128xf32>
    %38 = arith.truncf %37 : vector<128x128xf32> to vector<128x128xbf16>
    %c0_37 = arith.constant 0 : index
    %c0_38 = arith.constant 0 : index
    %39 = vector.load %arg13[%c0_37, %c0_38] : memref<128x1xbf16, #tpu.memory_space<vmem>>, vector<128x1xbf16>
    %cst_39 = arith.constant dense<0.000000e+00> : vector<128x1xf32>
    %40 = tpu.matmul %38, %39, %cst_39 {dimension_numbers = #tpu.dot_dimension_numbers<[1], [0], [0], [1], [0, 0, 1, 1], [], []>} : vector<128x128xbf16>, vector<128x1xbf16>, vector<128x1xf32> -> vector<128x1xf32>
    %c0_40 = arith.constant 0 : index
    %c0_41 = arith.constant 0 : index
    %41 = vector.load %arg14[%c0_40, %c0_41] : memref<1x1xf32, #tpu.memory_space<vmem>>, vector<1x1xf32>
    %42 = vector.broadcast %41 : vector<1x1xf32> to vector<128x1xf32>
    %43 = arith.addf %40, %42 : vector<128x1xf32>
    %cst_42 = arith.constant 0.000000e+00 : f32
    %44 = vector.broadcast %cst_42 : f32 to vector<128x1xf32>
    %45 = arith.maximumf %43, %44 : vector<128x1xf32>
    %46 = arith.truncf %37 : vector<128x128xf32> to vector<128x128xbf16>
    %c0_43 = arith.constant 0 : index
    %c0_44 = arith.constant 0 : index
    %47 = vector.load %arg15[%c0_43, %c0_44] : memref<128x128xbf16, #tpu.memory_space<vmem>>, vector<128x128xbf16>
    %cst_45 = arith.constant dense<0.000000e+00> : vector<128x128xf32>
    %48 = tpu.matmul %46, %47, %cst_45 {dimension_numbers = #tpu.dot_dimension_numbers<[1], [0], [0], [1], [0, 0, 1, 1], [], []>} : vector<128x128xbf16>, vector<128x128xbf16>, vector<128x128xf32> -> vector<128x128xf32>
    %49 = arith.truncf %3 : vector<128x3xf32> to vector<128x3xbf16>
    %c0_46 = arith.constant 0 : index
    %c0_47 = arith.constant 0 : index
    %50 = vector.load %arg16[%c0_46, %c0_47] : memref<3x128xbf16, #tpu.memory_space<vmem>>, vector<3x128xbf16>
    %cst_48 = arith.constant dense<0.000000e+00> : vector<128x128xf32>
    %51 = tpu.matmul %49, %50, %cst_48 {dimension_numbers = #tpu.dot_dimension_numbers<[1], [0], [0], [1], [0, 0, 1, 1], [], []>} : vector<128x3xbf16>, vector<3x128xbf16>, vector<128x128xf32> -> vector<128x128xf32>
    %52 = arith.addf %48, %51 : vector<128x128xf32>
    %53 = vector.broadcast %19 : vector<1x128xf32> to vector<128x128xf32>
    %54 = arith.addf %52, %53 : vector<128x128xf32>
    %c0_49 = arith.constant 0 : index
    %c0_50 = arith.constant 0 : index
    %55 = vector.load %arg18[%c0_49, %c0_50] : memref<1x128xf32, #tpu.memory_space<vmem>>, vector<1x128xf32>
    %56 = vector.broadcast %55 : vector<1x128xf32> to vector<128x128xf32>
    %57 = arith.addf %54, %56 : vector<128x128xf32>
    %cst_51 = arith.constant 0.000000e+00 : f32
    %58 = vector.broadcast %cst_51 : f32 to vector<128x128xf32>
    %59 = arith.maximumf %57, %58 : vector<128x128xf32>
    %60 = arith.truncf %59 : vector<128x128xf32> to vector<128x128xbf16>
    %c0_52 = arith.constant 0 : index
    %c0_53 = arith.constant 0 : index
    %61 = vector.load %arg19[%c0_52, %c0_53] : memref<128x3xbf16, #tpu.memory_space<vmem>>, vector<128x3xbf16>
    %cst_54 = arith.constant dense<0.000000e+00> : vector<128x3xf32>
    %62 = tpu.matmul %60, %61, %cst_54 {dimension_numbers = #tpu.dot_dimension_numbers<[1], [0], [0], [1], [0, 0, 1, 1], [], []>} : vector<128x128xbf16>, vector<128x3xbf16>, vector<128x3xf32> -> vector<128x3xf32>
    %c0_55 = arith.constant 0 : index
    %c0_56 = arith.constant 0 : index
    %63 = vector.load %arg20[%c0_55, %c0_56] : memref<1x3xf32, #tpu.memory_space<vmem>>, vector<1x3xf32>
    %64 = vector.broadcast %63 : vector<1x3xf32> to vector<128x3xf32>
    %65 = arith.addf %62, %64 : vector<128x3xf32>
    %66 = arith.negf %65 : vector<128x3xf32>
    %67 = math.exp %66 : vector<128x3xf32>
    %cst_57 = arith.constant 1.000000e+00 : f32
    %68 = vector.broadcast %cst_57 : f32 to vector<128x3xf32>
    %69 = arith.addf %68, %67 : vector<128x3xf32>
    %70 = arith.divf %68, %69 : vector<128x3xf32>
    %cst_58 = arith.constant 0.000000e+00 : f32
    %71 = vector.broadcast %cst_58 : f32 to vector<8x1xf32>
    %cst_59 = arith.constant 0.000000e+00 : f32
    %72 = vector.broadcast %cst_59 : f32 to vector<8x3xf32>
    %73 = vector.extract_strided_slice %45 {offsets = [0, 0], sizes = [8, 1], strides = [1, 1]} : vector<128x1xf32> to vector<8x1xf32>
    %74 = vector.extract_strided_slice %9 {offsets = [0, 0], sizes = [8, 1], strides = [1, 1]} : vector<128x1xf32> to vector<8x1xf32>
    %75 = arith.mulf %73, %74 : vector<8x1xf32>
    %cst_60 = arith.constant 0.000000e+00 : f32
    %76 = vector.broadcast %cst_60 : f32 to vector<8x1xf32>
    %77 = arith.subf %76, %71 : vector<8x1xf32>
    %78 = math.exp %77 : vector<8x1xf32>
    %cst_61 = arith.constant 0.000000e+00 : f32
    %79 = vector.broadcast %cst_61 : f32 to vector<8x1xf32>
    %80 = arith.subf %79, %75 : vector<8x1xf32>
    %81 = math.exp %80 : vector<8x1xf32>
    %cst_62 = arith.constant 1.000000e+00 : f32
    %82 = vector.broadcast %cst_62 : f32 to vector<8x1xf32>
    %83 = arith.subf %82, %81 : vector<8x1xf32>
    %84 = arith.mulf %83, %78 : vector<8x1xf32>
    %85 = vector.extract_strided_slice %70 {offsets = [0, 0], sizes = [8, 3], strides = [1, 1]} : vector<128x3xf32> to vector<8x3xf32>
    %86 = vector.broadcast %84 : vector<8x1xf32> to vector<8x3xf32>
    %87 = arith.mulf %86, %85 : vector<8x3xf32>
    %88 = arith.addf %72, %87 : vector<8x3xf32>
    %89 = arith.addf %71, %75 : vector<8x1xf32>
    %90 = vector.extract_strided_slice %45 {offsets = [8, 0], sizes = [8, 1], strides = [1, 1]} : vector<128x1xf32> to vector<8x1xf32>
    %91 = vector.extract_strided_slice %9 {offsets = [8, 0], sizes = [8, 1], strides = [1, 1]} : vector<128x1xf32> to vector<8x1xf32>
    %92 = arith.mulf %90, %91 : vector<8x1xf32>
    %cst_63 = arith.constant 0.000000e+00 : f32
    %93 = vector.broadcast %cst_63 : f32 to vector<8x1xf32>
    %94 = arith.subf %93, %89 : vector<8x1xf32>
    %95 = math.exp %94 : vector<8x1xf32>
    %cst_64 = arith.constant 0.000000e+00 : f32
    %96 = vector.broadcast %cst_64 : f32 to vector<8x1xf32>
    %97 = arith.subf %96, %92 : vector<8x1xf32>
    %98 = math.exp %97 : vector<8x1xf32>
    %cst_65 = arith.constant 1.000000e+00 : f32
    %99 = vector.broadcast %cst_65 : f32 to vector<8x1xf32>
    %100 = arith.subf %99, %98 : vector<8x1xf32>
    %101 = arith.mulf %100, %95 : vector<8x1xf32>
    %102 = vector.extract_strided_slice %70 {offsets = [8, 0], sizes = [8, 3], strides = [1, 1]} : vector<128x3xf32> to vector<8x3xf32>
    %103 = vector.broadcast %101 : vector<8x1xf32> to vector<8x3xf32>
    %104 = arith.mulf %103, %102 : vector<8x3xf32>
    %105 = arith.addf %88, %104 : vector<8x3xf32>
    %106 = arith.addf %89, %92 : vector<8x1xf32>
    %107 = vector.extract_strided_slice %45 {offsets = [16, 0], sizes = [8, 1], strides = [1, 1]} : vector<128x1xf32> to vector<8x1xf32>
    %108 = vector.extract_strided_slice %9 {offsets = [16, 0], sizes = [8, 1], strides = [1, 1]} : vector<128x1xf32> to vector<8x1xf32>
    %109 = arith.mulf %107, %108 : vector<8x1xf32>
    %cst_66 = arith.constant 0.000000e+00 : f32
    %110 = vector.broadcast %cst_66 : f32 to vector<8x1xf32>
    %111 = arith.subf %110, %106 : vector<8x1xf32>
    %112 = math.exp %111 : vector<8x1xf32>
    %cst_67 = arith.constant 0.000000e+00 : f32
    %113 = vector.broadcast %cst_67 : f32 to vector<8x1xf32>
    %114 = arith.subf %113, %109 : vector<8x1xf32>
    %115 = math.exp %114 : vector<8x1xf32>
    %cst_68 = arith.constant 1.000000e+00 : f32
    %116 = vector.broadcast %cst_68 : f32 to vector<8x1xf32>
    %117 = arith.subf %116, %115 : vector<8x1xf32>
    %118 = arith.mulf %117, %112 : vector<8x1xf32>
    %119 = vector.extract_strided_slice %70 {offsets = [16, 0], sizes = [8, 3], strides = [1, 1]} : vector<128x3xf32> to vector<8x3xf32>
    %120 = vector.broadcast %118 : vector<8x1xf32> to vector<8x3xf32>
    %121 = arith.mulf %120, %119 : vector<8x3xf32>
    %122 = arith.addf %105, %121 : vector<8x3xf32>
    %123 = arith.addf %106, %109 : vector<8x1xf32>
    %124 = vector.extract_strided_slice %45 {offsets = [24, 0], sizes = [8, 1], strides = [1, 1]} : vector<128x1xf32> to vector<8x1xf32>
    %125 = vector.extract_strided_slice %9 {offsets = [24, 0], sizes = [8, 1], strides = [1, 1]} : vector<128x1xf32> to vector<8x1xf32>
    %126 = arith.mulf %124, %125 : vector<8x1xf32>
    %cst_69 = arith.constant 0.000000e+00 : f32
    %127 = vector.broadcast %cst_69 : f32 to vector<8x1xf32>
    %128 = arith.subf %127, %123 : vector<8x1xf32>
    %129 = math.exp %128 : vector<8x1xf32>
    %cst_70 = arith.constant 0.000000e+00 : f32
    %130 = vector.broadcast %cst_70 : f32 to vector<8x1xf32>
    %131 = arith.subf %130, %126 : vector<8x1xf32>
    %132 = math.exp %131 : vector<8x1xf32>
    %cst_71 = arith.constant 1.000000e+00 : f32
    %133 = vector.broadcast %cst_71 : f32 to vector<8x1xf32>
    %134 = arith.subf %133, %132 : vector<8x1xf32>
    %135 = arith.mulf %134, %129 : vector<8x1xf32>
    %136 = vector.extract_strided_slice %70 {offsets = [24, 0], sizes = [8, 3], strides = [1, 1]} : vector<128x3xf32> to vector<8x3xf32>
    %137 = vector.broadcast %135 : vector<8x1xf32> to vector<8x3xf32>
    %138 = arith.mulf %137, %136 : vector<8x3xf32>
    %139 = arith.addf %122, %138 : vector<8x3xf32>
    %140 = arith.addf %123, %126 : vector<8x1xf32>
    %141 = vector.extract_strided_slice %45 {offsets = [32, 0], sizes = [8, 1], strides = [1, 1]} : vector<128x1xf32> to vector<8x1xf32>
    %142 = vector.extract_strided_slice %9 {offsets = [32, 0], sizes = [8, 1], strides = [1, 1]} : vector<128x1xf32> to vector<8x1xf32>
    %143 = arith.mulf %141, %142 : vector<8x1xf32>
    %cst_72 = arith.constant 0.000000e+00 : f32
    %144 = vector.broadcast %cst_72 : f32 to vector<8x1xf32>
    %145 = arith.subf %144, %140 : vector<8x1xf32>
    %146 = math.exp %145 : vector<8x1xf32>
    %cst_73 = arith.constant 0.000000e+00 : f32
    %147 = vector.broadcast %cst_73 : f32 to vector<8x1xf32>
    %148 = arith.subf %147, %143 : vector<8x1xf32>
    %149 = math.exp %148 : vector<8x1xf32>
    %cst_74 = arith.constant 1.000000e+00 : f32
    %150 = vector.broadcast %cst_74 : f32 to vector<8x1xf32>
    %151 = arith.subf %150, %149 : vector<8x1xf32>
    %152 = arith.mulf %151, %146 : vector<8x1xf32>
    %153 = vector.extract_strided_slice %70 {offsets = [32, 0], sizes = [8, 3], strides = [1, 1]} : vector<128x3xf32> to vector<8x3xf32>
    %154 = vector.broadcast %152 : vector<8x1xf32> to vector<8x3xf32>
    %155 = arith.mulf %154, %153 : vector<8x3xf32>
    %156 = arith.addf %139, %155 : vector<8x3xf32>
    %157 = arith.addf %140, %143 : vector<8x1xf32>
    %158 = vector.extract_strided_slice %45 {offsets = [40, 0], sizes = [8, 1], strides = [1, 1]} : vector<128x1xf32> to vector<8x1xf32>
    %159 = vector.extract_strided_slice %9 {offsets = [40, 0], sizes = [8, 1], strides = [1, 1]} : vector<128x1xf32> to vector<8x1xf32>
    %160 = arith.mulf %158, %159 : vector<8x1xf32>
    %cst_75 = arith.constant 0.000000e+00 : f32
    %161 = vector.broadcast %cst_75 : f32 to vector<8x1xf32>
    %162 = arith.subf %161, %157 : vector<8x1xf32>
    %163 = math.exp %162 : vector<8x1xf32>
    %cst_76 = arith.constant 0.000000e+00 : f32
    %164 = vector.broadcast %cst_76 : f32 to vector<8x1xf32>
    %165 = arith.subf %164, %160 : vector<8x1xf32>
    %166 = math.exp %165 : vector<8x1xf32>
    %cst_77 = arith.constant 1.000000e+00 : f32
    %167 = vector.broadcast %cst_77 : f32 to vector<8x1xf32>
    %168 = arith.subf %167, %166 : vector<8x1xf32>
    %169 = arith.mulf %168, %163 : vector<8x1xf32>
    %170 = vector.extract_strided_slice %70 {offsets = [40, 0], sizes = [8, 3], strides = [1, 1]} : vector<128x3xf32> to vector<8x3xf32>
    %171 = vector.broadcast %169 : vector<8x1xf32> to vector<8x3xf32>
    %172 = arith.mulf %171, %170 : vector<8x3xf32>
    %173 = arith.addf %156, %172 : vector<8x3xf32>
    %174 = arith.addf %157, %160 : vector<8x1xf32>
    %175 = vector.extract_strided_slice %45 {offsets = [48, 0], sizes = [8, 1], strides = [1, 1]} : vector<128x1xf32> to vector<8x1xf32>
    %176 = vector.extract_strided_slice %9 {offsets = [48, 0], sizes = [8, 1], strides = [1, 1]} : vector<128x1xf32> to vector<8x1xf32>
    %177 = arith.mulf %175, %176 : vector<8x1xf32>
    %cst_78 = arith.constant 0.000000e+00 : f32
    %178 = vector.broadcast %cst_78 : f32 to vector<8x1xf32>
    %179 = arith.subf %178, %174 : vector<8x1xf32>
    %180 = math.exp %179 : vector<8x1xf32>
    %cst_79 = arith.constant 0.000000e+00 : f32
    %181 = vector.broadcast %cst_79 : f32 to vector<8x1xf32>
    %182 = arith.subf %181, %177 : vector<8x1xf32>
    %183 = math.exp %182 : vector<8x1xf32>
    %cst_80 = arith.constant 1.000000e+00 : f32
    %184 = vector.broadcast %cst_80 : f32 to vector<8x1xf32>
    %185 = arith.subf %184, %183 : vector<8x1xf32>
    %186 = arith.mulf %185, %180 : vector<8x1xf32>
    %187 = vector.extract_strided_slice %70 {offsets = [48, 0], sizes = [8, 3], strides = [1, 1]} : vector<128x3xf32> to vector<8x3xf32>
    %188 = vector.broadcast %186 : vector<8x1xf32> to vector<8x3xf32>
    %189 = arith.mulf %188, %187 : vector<8x3xf32>
    %190 = arith.addf %173, %189 : vector<8x3xf32>
    %191 = arith.addf %174, %177 : vector<8x1xf32>
    %192 = vector.extract_strided_slice %45 {offsets = [56, 0], sizes = [8, 1], strides = [1, 1]} : vector<128x1xf32> to vector<8x1xf32>
    %193 = vector.extract_strided_slice %9 {offsets = [56, 0], sizes = [8, 1], strides = [1, 1]} : vector<128x1xf32> to vector<8x1xf32>
    %194 = arith.mulf %192, %193 : vector<8x1xf32>
    %cst_81 = arith.constant 0.000000e+00 : f32
    %195 = vector.broadcast %cst_81 : f32 to vector<8x1xf32>
    %196 = arith.subf %195, %191 : vector<8x1xf32>
    %197 = math.exp %196 : vector<8x1xf32>
    %cst_82 = arith.constant 0.000000e+00 : f32
    %198 = vector.broadcast %cst_82 : f32 to vector<8x1xf32>
    %199 = arith.subf %198, %194 : vector<8x1xf32>
    %200 = math.exp %199 : vector<8x1xf32>
    %cst_83 = arith.constant 1.000000e+00 : f32
    %201 = vector.broadcast %cst_83 : f32 to vector<8x1xf32>
    %202 = arith.subf %201, %200 : vector<8x1xf32>
    %203 = arith.mulf %202, %197 : vector<8x1xf32>
    %204 = vector.extract_strided_slice %70 {offsets = [56, 0], sizes = [8, 3], strides = [1, 1]} : vector<128x3xf32> to vector<8x3xf32>
    %205 = vector.broadcast %203 : vector<8x1xf32> to vector<8x3xf32>
    %206 = arith.mulf %205, %204 : vector<8x3xf32>
    %207 = arith.addf %190, %206 : vector<8x3xf32>
    %208 = arith.addf %191, %194 : vector<8x1xf32>
    %209 = vector.extract_strided_slice %45 {offsets = [64, 0], sizes = [8, 1], strides = [1, 1]} : vector<128x1xf32> to vector<8x1xf32>
    %210 = vector.extract_strided_slice %9 {offsets = [64, 0], sizes = [8, 1], strides = [1, 1]} : vector<128x1xf32> to vector<8x1xf32>
    %211 = arith.mulf %209, %210 : vector<8x1xf32>
    %cst_84 = arith.constant 0.000000e+00 : f32
    %212 = vector.broadcast %cst_84 : f32 to vector<8x1xf32>
    %213 = arith.subf %212, %208 : vector<8x1xf32>
    %214 = math.exp %213 : vector<8x1xf32>
    %cst_85 = arith.constant 0.000000e+00 : f32
    %215 = vector.broadcast %cst_85 : f32 to vector<8x1xf32>
    %216 = arith.subf %215, %211 : vector<8x1xf32>
    %217 = math.exp %216 : vector<8x1xf32>
    %cst_86 = arith.constant 1.000000e+00 : f32
    %218 = vector.broadcast %cst_86 : f32 to vector<8x1xf32>
    %219 = arith.subf %218, %217 : vector<8x1xf32>
    %220 = arith.mulf %219, %214 : vector<8x1xf32>
    %221 = vector.extract_strided_slice %70 {offsets = [64, 0], sizes = [8, 3], strides = [1, 1]} : vector<128x3xf32> to vector<8x3xf32>
    %222 = vector.broadcast %220 : vector<8x1xf32> to vector<8x3xf32>
    %223 = arith.mulf %222, %221 : vector<8x3xf32>
    %224 = arith.addf %207, %223 : vector<8x3xf32>
    %225 = arith.addf %208, %211 : vector<8x1xf32>
    %226 = vector.extract_strided_slice %45 {offsets = [72, 0], sizes = [8, 1], strides = [1, 1]} : vector<128x1xf32> to vector<8x1xf32>
    %227 = vector.extract_strided_slice %9 {offsets = [72, 0], sizes = [8, 1], strides = [1, 1]} : vector<128x1xf32> to vector<8x1xf32>
    %228 = arith.mulf %226, %227 : vector<8x1xf32>
    %cst_87 = arith.constant 0.000000e+00 : f32
    %229 = vector.broadcast %cst_87 : f32 to vector<8x1xf32>
    %230 = arith.subf %229, %225 : vector<8x1xf32>
    %231 = math.exp %230 : vector<8x1xf32>
    %cst_88 = arith.constant 0.000000e+00 : f32
    %232 = vector.broadcast %cst_88 : f32 to vector<8x1xf32>
    %233 = arith.subf %232, %228 : vector<8x1xf32>
    %234 = math.exp %233 : vector<8x1xf32>
    %cst_89 = arith.constant 1.000000e+00 : f32
    %235 = vector.broadcast %cst_89 : f32 to vector<8x1xf32>
    %236 = arith.subf %235, %234 : vector<8x1xf32>
    %237 = arith.mulf %236, %231 : vector<8x1xf32>
    %238 = vector.extract_strided_slice %70 {offsets = [72, 0], sizes = [8, 3], strides = [1, 1]} : vector<128x3xf32> to vector<8x3xf32>
    %239 = vector.broadcast %237 : vector<8x1xf32> to vector<8x3xf32>
    %240 = arith.mulf %239, %238 : vector<8x3xf32>
    %241 = arith.addf %224, %240 : vector<8x3xf32>
    %242 = arith.addf %225, %228 : vector<8x1xf32>
    %243 = vector.extract_strided_slice %45 {offsets = [80, 0], sizes = [8, 1], strides = [1, 1]} : vector<128x1xf32> to vector<8x1xf32>
    %244 = vector.extract_strided_slice %9 {offsets = [80, 0], sizes = [8, 1], strides = [1, 1]} : vector<128x1xf32> to vector<8x1xf32>
    %245 = arith.mulf %243, %244 : vector<8x1xf32>
    %cst_90 = arith.constant 0.000000e+00 : f32
    %246 = vector.broadcast %cst_90 : f32 to vector<8x1xf32>
    %247 = arith.subf %246, %242 : vector<8x1xf32>
    %248 = math.exp %247 : vector<8x1xf32>
    %cst_91 = arith.constant 0.000000e+00 : f32
    %249 = vector.broadcast %cst_91 : f32 to vector<8x1xf32>
    %250 = arith.subf %249, %245 : vector<8x1xf32>
    %251 = math.exp %250 : vector<8x1xf32>
    %cst_92 = arith.constant 1.000000e+00 : f32
    %252 = vector.broadcast %cst_92 : f32 to vector<8x1xf32>
    %253 = arith.subf %252, %251 : vector<8x1xf32>
    %254 = arith.mulf %253, %248 : vector<8x1xf32>
    %255 = vector.extract_strided_slice %70 {offsets = [80, 0], sizes = [8, 3], strides = [1, 1]} : vector<128x3xf32> to vector<8x3xf32>
    %256 = vector.broadcast %254 : vector<8x1xf32> to vector<8x3xf32>
    %257 = arith.mulf %256, %255 : vector<8x3xf32>
    %258 = arith.addf %241, %257 : vector<8x3xf32>
    %259 = arith.addf %242, %245 : vector<8x1xf32>
    %260 = vector.extract_strided_slice %45 {offsets = [88, 0], sizes = [8, 1], strides = [1, 1]} : vector<128x1xf32> to vector<8x1xf32>
    %261 = vector.extract_strided_slice %9 {offsets = [88, 0], sizes = [8, 1], strides = [1, 1]} : vector<128x1xf32> to vector<8x1xf32>
    %262 = arith.mulf %260, %261 : vector<8x1xf32>
    %cst_93 = arith.constant 0.000000e+00 : f32
    %263 = vector.broadcast %cst_93 : f32 to vector<8x1xf32>
    %264 = arith.subf %263, %259 : vector<8x1xf32>
    %265 = math.exp %264 : vector<8x1xf32>
    %cst_94 = arith.constant 0.000000e+00 : f32
    %266 = vector.broadcast %cst_94 : f32 to vector<8x1xf32>
    %267 = arith.subf %266, %262 : vector<8x1xf32>
    %268 = math.exp %267 : vector<8x1xf32>
    %cst_95 = arith.constant 1.000000e+00 : f32
    %269 = vector.broadcast %cst_95 : f32 to vector<8x1xf32>
    %270 = arith.subf %269, %268 : vector<8x1xf32>
    %271 = arith.mulf %270, %265 : vector<8x1xf32>
    %272 = vector.extract_strided_slice %70 {offsets = [88, 0], sizes = [8, 3], strides = [1, 1]} : vector<128x3xf32> to vector<8x3xf32>
    %273 = vector.broadcast %271 : vector<8x1xf32> to vector<8x3xf32>
    %274 = arith.mulf %273, %272 : vector<8x3xf32>
    %275 = arith.addf %258, %274 : vector<8x3xf32>
    %276 = arith.addf %259, %262 : vector<8x1xf32>
    %277 = vector.extract_strided_slice %45 {offsets = [96, 0], sizes = [8, 1], strides = [1, 1]} : vector<128x1xf32> to vector<8x1xf32>
    %278 = vector.extract_strided_slice %9 {offsets = [96, 0], sizes = [8, 1], strides = [1, 1]} : vector<128x1xf32> to vector<8x1xf32>
    %279 = arith.mulf %277, %278 : vector<8x1xf32>
    %cst_96 = arith.constant 0.000000e+00 : f32
    %280 = vector.broadcast %cst_96 : f32 to vector<8x1xf32>
    %281 = arith.subf %280, %276 : vector<8x1xf32>
    %282 = math.exp %281 : vector<8x1xf32>
    %cst_97 = arith.constant 0.000000e+00 : f32
    %283 = vector.broadcast %cst_97 : f32 to vector<8x1xf32>
    %284 = arith.subf %283, %279 : vector<8x1xf32>
    %285 = math.exp %284 : vector<8x1xf32>
    %cst_98 = arith.constant 1.000000e+00 : f32
    %286 = vector.broadcast %cst_98 : f32 to vector<8x1xf32>
    %287 = arith.subf %286, %285 : vector<8x1xf32>
    %288 = arith.mulf %287, %282 : vector<8x1xf32>
    %289 = vector.extract_strided_slice %70 {offsets = [96, 0], sizes = [8, 3], strides = [1, 1]} : vector<128x3xf32> to vector<8x3xf32>
    %290 = vector.broadcast %288 : vector<8x1xf32> to vector<8x3xf32>
    %291 = arith.mulf %290, %289 : vector<8x3xf32>
    %292 = arith.addf %275, %291 : vector<8x3xf32>
    %293 = arith.addf %276, %279 : vector<8x1xf32>
    %294 = vector.extract_strided_slice %45 {offsets = [104, 0], sizes = [8, 1], strides = [1, 1]} : vector<128x1xf32> to vector<8x1xf32>
    %295 = vector.extract_strided_slice %9 {offsets = [104, 0], sizes = [8, 1], strides = [1, 1]} : vector<128x1xf32> to vector<8x1xf32>
    %296 = arith.mulf %294, %295 : vector<8x1xf32>
    %cst_99 = arith.constant 0.000000e+00 : f32
    %297 = vector.broadcast %cst_99 : f32 to vector<8x1xf32>
    %298 = arith.subf %297, %293 : vector<8x1xf32>
    %299 = math.exp %298 : vector<8x1xf32>
    %cst_100 = arith.constant 0.000000e+00 : f32
    %300 = vector.broadcast %cst_100 : f32 to vector<8x1xf32>
    %301 = arith.subf %300, %296 : vector<8x1xf32>
    %302 = math.exp %301 : vector<8x1xf32>
    %cst_101 = arith.constant 1.000000e+00 : f32
    %303 = vector.broadcast %cst_101 : f32 to vector<8x1xf32>
    %304 = arith.subf %303, %302 : vector<8x1xf32>
    %305 = arith.mulf %304, %299 : vector<8x1xf32>
    %306 = vector.extract_strided_slice %70 {offsets = [104, 0], sizes = [8, 3], strides = [1, 1]} : vector<128x3xf32> to vector<8x3xf32>
    %307 = vector.broadcast %305 : vector<8x1xf32> to vector<8x3xf32>
    %308 = arith.mulf %307, %306 : vector<8x3xf32>
    %309 = arith.addf %292, %308 : vector<8x3xf32>
    %310 = arith.addf %293, %296 : vector<8x1xf32>
    %311 = vector.extract_strided_slice %45 {offsets = [112, 0], sizes = [8, 1], strides = [1, 1]} : vector<128x1xf32> to vector<8x1xf32>
    %312 = vector.extract_strided_slice %9 {offsets = [112, 0], sizes = [8, 1], strides = [1, 1]} : vector<128x1xf32> to vector<8x1xf32>
    %313 = arith.mulf %311, %312 : vector<8x1xf32>
    %cst_102 = arith.constant 0.000000e+00 : f32
    %314 = vector.broadcast %cst_102 : f32 to vector<8x1xf32>
    %315 = arith.subf %314, %310 : vector<8x1xf32>
    %316 = math.exp %315 : vector<8x1xf32>
    %cst_103 = arith.constant 0.000000e+00 : f32
    %317 = vector.broadcast %cst_103 : f32 to vector<8x1xf32>
    %318 = arith.subf %317, %313 : vector<8x1xf32>
    %319 = math.exp %318 : vector<8x1xf32>
    %cst_104 = arith.constant 1.000000e+00 : f32
    %320 = vector.broadcast %cst_104 : f32 to vector<8x1xf32>
    %321 = arith.subf %320, %319 : vector<8x1xf32>
    %322 = arith.mulf %321, %316 : vector<8x1xf32>
    %323 = vector.extract_strided_slice %70 {offsets = [112, 0], sizes = [8, 3], strides = [1, 1]} : vector<128x3xf32> to vector<8x3xf32>
    %324 = vector.broadcast %322 : vector<8x1xf32> to vector<8x3xf32>
    %325 = arith.mulf %324, %323 : vector<8x3xf32>
    %326 = arith.addf %309, %325 : vector<8x3xf32>
    %327 = arith.addf %310, %313 : vector<8x1xf32>
    %328 = vector.extract_strided_slice %45 {offsets = [120, 0], sizes = [8, 1], strides = [1, 1]} : vector<128x1xf32> to vector<8x1xf32>
    %329 = vector.extract_strided_slice %9 {offsets = [120, 0], sizes = [8, 1], strides = [1, 1]} : vector<128x1xf32> to vector<8x1xf32>
    %330 = arith.mulf %328, %329 : vector<8x1xf32>
    %cst_105 = arith.constant 0.000000e+00 : f32
    %331 = vector.broadcast %cst_105 : f32 to vector<8x1xf32>
    %332 = arith.subf %331, %327 : vector<8x1xf32>
    %333 = math.exp %332 : vector<8x1xf32>
    %cst_106 = arith.constant 0.000000e+00 : f32
    %334 = vector.broadcast %cst_106 : f32 to vector<8x1xf32>
    %335 = arith.subf %334, %330 : vector<8x1xf32>
    %336 = math.exp %335 : vector<8x1xf32>
    %cst_107 = arith.constant 1.000000e+00 : f32
    %337 = vector.broadcast %cst_107 : f32 to vector<8x1xf32>
    %338 = arith.subf %337, %336 : vector<8x1xf32>
    %339 = arith.mulf %338, %333 : vector<8x1xf32>
    %340 = vector.extract_strided_slice %70 {offsets = [120, 0], sizes = [8, 3], strides = [1, 1]} : vector<128x3xf32> to vector<8x3xf32>
    %341 = vector.broadcast %339 : vector<8x1xf32> to vector<8x3xf32>
    %342 = arith.mulf %341, %340 : vector<8x3xf32>
    %343 = arith.addf %326, %342 : vector<8x3xf32>
    %344 = math.absf %13 : vector<8x1xf32>
    %cst_108 = arith.constant dense<0.000000e+00> : vector<1xf32>
    %345 = vector.multi_reduction <add>, %344, %cst_108 [0] : vector<8x1xf32> to vector<1xf32>
    %346 = vector.shape_cast %345 : vector<1xf32> to vector<1x1xf32>
    %cst_109 = arith.constant 9.99999971E-10 : f32
    %347 = vector.broadcast %cst_109 : f32 to vector<1x1xf32>
    %348 = arith.addf %346, %347 : vector<1x1xf32>
    %349 = arith.subf %343, %11 : vector<8x3xf32>
    %350 = arith.mulf %349, %349 : vector<8x3xf32>
    %cst_110 = arith.constant dense<0.000000e+00> : vector<8xf32>
    %351 = vector.multi_reduction <add>, %350, %cst_110 [1] : vector<8x3xf32> to vector<8xf32>
    %352 = vector.shape_cast %351 : vector<8xf32> to vector<8x1xf32>
    %353 = arith.mulf %352, %344 : vector<8x1xf32>
    %cst_111 = arith.constant dense<0.000000e+00> : vector<1xf32>
    %354 = vector.multi_reduction <add>, %353, %cst_111 [0] : vector<8x1xf32> to vector<1xf32>
    %355 = vector.shape_cast %354 : vector<1xf32> to vector<1x1xf32>
    %356 = arith.divf %355, %348 : vector<1x1xf32>
    %cst_112 = arith.constant 0.000000e+00 : f32
    %357 = vector.broadcast %cst_112 : f32 to vector<8x1xf32>
    %358 = arith.subf %357, %13 : vector<8x1xf32>
    %cst_113 = arith.constant 5.000000e-01 : f32
    %359 = vector.broadcast %cst_113 : f32 to vector<8x1xf32>
    %360 = arith.subf %359, %333 : vector<8x1xf32>
    %361 = arith.mulf %358, %360 : vector<8x1xf32>
    %362 = math.exp %361 : vector<8x1xf32>
    %363 = arith.mulf %362, %344 : vector<8x1xf32>
    %cst_114 = arith.constant dense<0.000000e+00> : vector<1xf32>
    %364 = vector.multi_reduction <add>, %363, %cst_114 [0] : vector<8x1xf32> to vector<1xf32>
    %365 = vector.shape_cast %364 : vector<1xf32> to vector<1x1xf32>
    %366 = arith.divf %365, %348 : vector<1x1xf32>
    %367 = arith.mulf %5, %5 : vector<1x32xf32>
    %cst_115 = arith.constant dense<0.000000e+00> : vector<1xf32>
    %368 = vector.multi_reduction <add>, %367, %cst_115 [1] : vector<1x32xf32> to vector<1xf32>
    %369 = vector.shape_cast %368 : vector<1xf32> to vector<1x1xf32>
    %370 = math.sqrt %369 : vector<1x1xf32>
    %371 = arith.mulf %7, %7 : vector<1x32xf32>
    %cst_116 = arith.constant dense<0.000000e+00> : vector<1xf32>
    %372 = vector.multi_reduction <add>, %371, %cst_116 [1] : vector<1x32xf32> to vector<1xf32>
    %373 = vector.shape_cast %372 : vector<1xf32> to vector<1x1xf32>
    %374 = math.sqrt %373 : vector<1x1xf32>
    %375 = arith.addf %370, %374 : vector<1x1xf32>
    %cst_117 = arith.constant 0.00999999977 : f32
    %376 = vector.broadcast %cst_117 : f32 to vector<1x1xf32>
    %377 = arith.mulf %376, %366 : vector<1x1xf32>
    %378 = arith.addf %356, %377 : vector<1x1xf32>
    %cst_118 = arith.constant 0.000000e+00 : f32
    %379 = vector.broadcast %cst_118 : f32 to vector<1x1xf32>
    %380 = arith.addf %378, %379 : vector<1x1xf32>
    %381 = tpu.iota {dimensions = array<i32: 2>} : vector<1x1x128xi32>
    %c0_i32 = arith.constant 0 : i32
    %382 = vector.broadcast %c0_i32 : i32 to vector<1x1x128xi32>
    %383 = arith.cmpi eq, %381, %382 : vector<1x1x128xi32>
    %cst_119 = arith.constant 0.000000e+00 : f32
    %384 = vector.shape_cast %356 : vector<1x1xf32> to vector<1x1x1xf32>
    %385 = vector.broadcast %384 : vector<1x1x1xf32> to vector<1x1x128xf32>
    %386 = vector.broadcast %cst_119 : f32 to vector<1x1x128xf32>
    %387 = arith.select %383, %385, %386 : vector<1x1x128xi1>, vector<1x1x128xf32>
    %c1_i32 = arith.constant 1 : i32
    %388 = vector.broadcast %c1_i32 : i32 to vector<1x1x128xi32>
    %389 = arith.cmpi eq, %381, %388 : vector<1x1x128xi32>
    %cst_120 = arith.constant 0.000000e+00 : f32
    %390 = vector.shape_cast %366 : vector<1x1xf32> to vector<1x1x1xf32>
    %391 = vector.broadcast %390 : vector<1x1x1xf32> to vector<1x1x128xf32>
    %392 = vector.broadcast %cst_120 : f32 to vector<1x1x128xf32>
    %393 = arith.select %389, %391, %392 : vector<1x1x128xi1>, vector<1x1x128xf32>
    %394 = arith.addf %387, %393 : vector<1x1x128xf32>
    %c2_i32 = arith.constant 2 : i32
    %395 = vector.broadcast %c2_i32 : i32 to vector<1x1x128xi32>
    %396 = arith.cmpi eq, %381, %395 : vector<1x1x128xi32>
    %cst_121 = arith.constant 0.000000e+00 : f32
    %397 = vector.shape_cast %375 : vector<1x1xf32> to vector<1x1x1xf32>
    %398 = vector.broadcast %397 : vector<1x1x1xf32> to vector<1x1x128xf32>
    %399 = vector.broadcast %cst_121 : f32 to vector<1x1x128xf32>
    %400 = arith.select %396, %398, %399 : vector<1x1x128xi1>, vector<1x1x128xf32>
    %401 = arith.addf %394, %400 : vector<1x1x128xf32>
    %c3_i32 = arith.constant 3 : i32
    %402 = vector.broadcast %c3_i32 : i32 to vector<1x1x128xi32>
    %403 = arith.cmpi eq, %381, %402 : vector<1x1x128xi32>
    %cst_122 = arith.constant 0.000000e+00 : f32
    %404 = vector.shape_cast %380 : vector<1x1xf32> to vector<1x1x1xf32>
    %405 = vector.broadcast %404 : vector<1x1x1xf32> to vector<1x1x128xf32>
    %406 = vector.broadcast %cst_122 : f32 to vector<1x1x128xf32>
    %407 = arith.select %403, %405, %406 : vector<1x1x128xi1>, vector<1x1x128xf32>
    %408 = arith.addf %401, %407 : vector<1x1x128xf32>
    %c0_123 = arith.constant 0 : index
    %c0_124 = arith.constant 0 : index
    %c0_125 = arith.constant 0 : index
    %409 = vector.load %arg21[%c0_123, %c0_124, %c0_125] : memref<1x1x128xf32, #tpu.memory_space<vmem>>, vector<1x1x128xf32>
    tpu.vector_store %arg21[%c0_123, %c0_124, %c0_125], %408 {strides = array<i32>} : memref<1x1x128xf32, #tpu.memory_space<vmem>>, vector<1x1x128xf32>,
    return
  }
  func.func @transform_0(%arg0: i32) -> (i32, i32, i32) {
    %c0_i32 = arith.constant 0 : i32
    %c0_i32_0 = arith.constant 0 : i32
    %c0_i32_1 = arith.constant 0 : i32
    return %arg0, %c0_i32, %c0_i32_0 : i32, i32, i32
  }
  func.func @transform_1(%arg0: i32) -> (i32, i32, i32) {
    %c0_i32 = arith.constant 0 : i32
    %c0_i32_0 = arith.constant 0 : i32
    %c0_i32_1 = arith.constant 0 : i32
    return %arg0, %c0_i32, %c0_i32_0 : i32, i32, i32
  }
  func.func @transform_2(%arg0: i32) -> (i32, i32, i32) {
    %c0_i32 = arith.constant 0 : i32
    %c0_i32_0 = arith.constant 0 : i32
    %c0_i32_1 = arith.constant 0 : i32
    return %arg0, %c0_i32, %c0_i32_0 : i32, i32, i32
  }
  func.func @transform_3(%arg0: i32) -> (i32, i32, i32) {
    %c0_i32 = arith.constant 0 : i32
    %c0_i32_0 = arith.constant 0 : i32
    %c0_i32_1 = arith.constant 0 : i32
    return %arg0, %c0_i32, %c0_i32_0 : i32, i32, i32
  }
  func.func @transform_4(%arg0: i32) -> (i32, i32, i32) {
    %c0_i32 = arith.constant 0 : i32
    %c0_i32_0 = arith.constant 0 : i32
    %c0_i32_1 = arith.constant 0 : i32
    return %arg0, %c0_i32, %c0_i32_0 : i32, i32, i32
  }
  func.func @transform_5(%arg0: i32) -> (i32, i32, i32) {
    %c0_i32 = arith.constant 0 : i32
    %c0_i32_0 = arith.constant 0 : i32
    %c0_i32_1 = arith.constant 0 : i32
    return %arg0, %c0_i32, %c0_i32_0 : i32, i32, i32
  }
  func.func @transform_6(%arg0: i32) -> (i32, i32, i32) {
    %c0_i32 = arith.constant 0 : i32
    %c0_i32_0 = arith.constant 0 : i32
    %c0_i32_1 = arith.constant 0 : i32
    return %arg0, %c0_i32, %c0_i32_0 : i32, i32, i32
  }
  func.func @transform_7(%arg0: i32) -> (i32, i32) {
    %c0_i32 = arith.constant 0 : i32
    %c0_i32_0 = arith.constant 0 : i32
    %c0_i32_1 = arith.constant 0 : i32
    return %c0_i32, %c0_i32_0 : i32, i32
  }
  func.func @transform_8(%arg0: i32) -> (i32, i32) {
    %c0_i32 = arith.constant 0 : i32
    %c0_i32_0 = arith.constant 0 : i32
    %c0_i32_1 = arith.constant 0 : i32
    return %c0_i32, %c0_i32_0 : i32, i32
  }
  func.func @transform_9(%arg0: i32) -> (i32, i32) {
    %c0_i32 = arith.constant 0 : i32
    %c0_i32_0 = arith.constant 0 : i32
    %c0_i32_1 = arith.constant 0 : i32
    return %c0_i32, %c0_i32_0 : i32, i32
  }
  func.func @transform_10(%arg0: i32) -> (i32, i32) {
    %c0_i32 = arith.constant 0 : i32
    %c0_i32_0 = arith.constant 0 : i32
    %c0_i32_1 = arith.constant 0 : i32
    return %c0_i32, %c0_i32_0 : i32, i32
  }
  func.func @transform_11(%arg0: i32) -> (i32, i32) {
    %c0_i32 = arith.constant 0 : i32
    %c0_i32_0 = arith.constant 0 : i32
    %c0_i32_1 = arith.constant 0 : i32
    return %c0_i32, %c0_i32_0 : i32, i32
  }
  func.func @transform_12(%arg0: i32) -> (i32, i32) {
    %c0_i32 = arith.constant 0 : i32
    %c0_i32_0 = arith.constant 0 : i32
    %c0_i32_1 = arith.constant 0 : i32
    return %c0_i32, %c0_i32_0 : i32, i32
  }
  func.func @transform_13(%arg0: i32) -> (i32, i32) {
    %c0_i32 = arith.constant 0 : i32
    %c0_i32_0 = arith.constant 0 : i32
    %c0_i32_1 = arith.constant 0 : i32
    return %c0_i32, %c0_i32_0 : i32, i32
  }
  func.func @transform_14(%arg0: i32) -> (i32, i32) {
    %c0_i32 = arith.constant 0 : i32
    %c0_i32_0 = arith.constant 0 : i32
    %c0_i32_1 = arith.constant 0 : i32
    return %c0_i32, %c0_i32_0 : i32, i32
  }
  func.func @transform_15(%arg0: i32) -> (i32, i32) {
    %c0_i32 = arith.constant 0 : i32
    %c0_i32_0 = arith.constant 0 : i32
    %c0_i32_1 = arith.constant 0 : i32
    return %c0_i32, %c0_i32_0 : i32, i32
  }
  func.func @transform_16(%arg0: i32) -> (i32, i32) {
    %c0_i32 = arith.constant 0 : i32
    %c0_i32_0 = arith.constant 0 : i32
    %c0_i32_1 = arith.constant 0 : i32
    return %c0_i32, %c0_i32_0 : i32, i32
  }
  func.func @transform_17(%arg0: i32) -> (i32, i32) {
    %c0_i32 = arith.constant 0 : i32
    %c0_i32_0 = arith.constant 0 : i32
    %c0_i32_1 = arith.constant 0 : i32
    return %c0_i32, %c0_i32_0 : i32, i32
  }
  func.func @transform_18(%arg0: i32) -> (i32, i32) {
    %c0_i32 = arith.constant 0 : i32
    %c0_i32_0 = arith.constant 0 : i32
    %c0_i32_1 = arith.constant 0 : i32
    return %c0_i32, %c0_i32_0 : i32, i32
  }
  func.func @transform_19(%arg0: i32) -> (i32, i32) {
    %c0_i32 = arith.constant 0 : i32
    %c0_i32_0 = arith.constant 0 : i32
    %c0_i32_1 = arith.constant 0 : i32
    return %c0_i32, %c0_i32_0 : i32, i32
  }
  func.func @transform_20(%arg0: i32) -> (i32, i32, i32) {
    %c0_i32 = arith.constant 0 : i32
    %c0_i32_0 = arith.constant 0 : i32
    %c0_i32_1 = arith.constant 0 : i32
    return %arg0, %c0_i32, %c0_i32_0 : i32, i32, i32
  }
}

</mosaic_0001>

<bundles_post_ra>
// kernel: parallel_model_forward.1
= control target key start
LH: loop header
LB: loop body
LE: loop exit
PB: predicated region body
PF: predicated region fallthrough
CT: control target
= control target key end

     0   :  { %s3250_s23 = smov 0   ;;  %s3832_s0 = inlined_call_operand.vmem [shape: f32[2,128,3], index: 0, kind: input, shape index: {}]   ;;  %s3833_s1 = inlined_call_operand.vmem [shape: f32[2,128,3], index: 1, kind: input, shape index: {}]   ;;  %s3834_s2 = inlined_call_operand.vmem [shape: f32[2,1,32], index: 2, kind: input, shape index: {}]   ;;  %s3835_s3 = inlined_call_operand.vmem [shape: f32[2,1,32], index: 3, kind: input, shape index: {}]   ;;  %s3836_s4 = inlined_call_operand.vmem [shape: f32[2,128,1], index: 4, kind: input, shape index: {}]   ;;  %s3837_s5 = inlined_call_operand.vmem [shape: f32[2,8,3], index: 5, kind: input, shape index: {}]   ;;  %s3838_s6 = inlined_call_operand.vmem [shape: f32[2,8,1], index: 6, kind: input, shape index: {}]   ;;  %s3839_s7 = inlined_call_operand.vmem [shape: bf16[3,128], index: 7, kind: input, shape index: {}]   ;;  %s3840_s8 = inlined_call_operand.vmem [shape: bf16[32,128], index: 8, kind: input, shape index: {}]   ;;  %s3841_s9 = inlined_call_operand.vmem [shape: f32[1,128], index: 9, kind: input, shape index: {}]   ;;  %s3842_s10 = inlined_call_operand.vmem [shape: bf16[128,128], index: 10, kind: input, shape index: {}]   ;;  %s3843_s11 = inlined_call_operand.vmem [shape: f32[1,128], index: 11, kind: input, shape index: {}]   ;;  %s3844_s12 = inlined_call_operand.vmem [shape: bf16[128,1], index: 12, kind: input, shape index: {}]   ;;  %s3845_s13 = inlined_call_operand.<no memory space> [shape: f32[1,1], index: 13, kind: input, shape index: {}]   ;;  %s3846_s14 = inlined_call_operand.vmem [shape: bf16[128,128], index: 14, kind: input, shape index: {}]   ;;  %s3847_s15 = inlined_call_operand.vmem [shape: bf16[3,128], index: 15, kind: input, shape index: {}]   ;;  %s3848_s16 = inlined_call_operand.vmem [shape: bf16[32,128], index: 16, kind: input, shape index: {}]   ;;  %s3849_s17 = inlined_call_operand.vmem [shape: f32[1,128], index: 17, kind: input, shape index: {}]   ;;  %s3850_s18 = inlined_call_operand.vmem [shape: bf16[128,3], index: 18, kind: input, shape index: {}]   ;;  %s3851_s19 = inlined_call_operand.vmem [shape: f32[1,3], index: 19, kind: input, shape index: {}]   ;;  %s3852_s20 = inlined_call_operand.vmem [shape: f32[2,1,128], index: 20, kind: output, shape index: {}]  }
   0x1   :  { %3853 = sst [smem:[#allocation3_spill]] %s3832_s0  ;;  %v25_v0 = vstv %s3845_s13 }
   0x2   :  { %3854 = sst [smem:[#allocation4_spill]] %s3833_s1  ;;  %26 = vst [vmem:[#allocation2] sm:$0x1] %v25_v0 }
   0x3   :  { %3855 = sst [smem:[#allocation5_spill]] %s3834_s2 }
   0x4   :  { %3856 = sst [smem:[#allocation6_spill]] %s3835_s3 }
   0x5   :  { %3857 = sst [smem:[#allocation7_spill]] %s3836_s4 }
   0x6 LB: > { %s2569_s24 = sadd.s32 4294967295, %s3136_s23   ;;  %p2573_p0 = scmp.ge.s32.totalorder %s3136_s23, 1  ;;  %s3136_s23 = sphi %s3250_s23, %s32_s23  }
   0x7   : > { %p618_p1 = scmp.lt.s32.totalorder %s3136_s23, 3 }
   0x9   : > { %p619_p2 = pnand %p2573_p0, %p618_p1 }
   0xa   : > { %v2960_v1 = vld [vmem:[%s3840_s8] sm:$0xff] (!%p619_p2)   ;;  %v3138_v2 = vmov (!%p619_p2), 0.0   ;;  %v2961_v3 = vld [vmem:[%s3840_s8 + $0x8] sm:$0xff] (!%p619_p2)   ;;  %vm3139_vm0 = vmmov (!%p619_p2), 0   ;;  %p698_p3 = scmp.lt.s32.totalorder (!%p619_p2), %s2569_s24, 1  ;;  %vm942_vm1 = vcmask (!%p619_p2), 1040384   ;;  %v913_v55 = vlaneseq (!%p619_p2) }
   0xb   : > { %622 = sbr.rel (%p619_p2) target bundleno = 1311 (0x51f), region = 100  ;;  %2750 = vmatprep.subr.bf16.mxu0 (!%p619_p2), %v3138_v2  ;;  %2754 = vmatprep.mubr.msk.bf16.mxu0 (!%p619_p2), %vm3139_vm0, %v3138_v2  ;;  %vm800_vm2 = vcmask (!%p619_p2), 261120   ;;  %v2962_v4 = vld [vmem:[%s3848_s16] sm:$0xff] (!%p619_p2)   ;;  %s3858_s30 = sld [smem:[#allocation5_spill]] (!%p619_p2)  ;;  %vm943_vm3 = vcmask (!%p619_p2), 1041408   ;;  %v3140_v5 = vmov (!%p619_p2), 65535  }
   0xc   : > { %2751 = vmatpush3.bf16.msra.mxu0 (!%p619_p2), %v2960_v1  ;;  %v944_v6 = vsel (!%p619_p2), %vm942_vm1, 4294967295, %v3140_v5  ;;  %v2964_v7 = vld [vmem:[%s3842_s10] sm:$0xff] (!%p619_p2)   ;;  %s3859_s25 = sld [smem:[#allocation6_spill]] (!%p619_p2)  ;;  %s3860_s27 = sld [smem:[#allocation3_spill]] (!%p619_p2)  ;;  %v2963_v12 = vld [vmem:[%s3848_s16 + $0x8] sm:$0xff] (!%p619_p2)   ;;  %vm917_vm4 = vcmask (!%p619_p2), 23552  }
   0xd   : > { %2752 = vmatprep.subr.bf16.mxu0 (!%p619_p2), %v3138_v2  ;;  %2784 = vmatprep.subr.bf16.mxu1 (!%p619_p2), %v2964_v7  ;;  %v912_v10 = vld [vmem:[%s3839_s7] sm:$0x3] (!%p619_p2)  ;;  %v3298_v11 = vsel (!%p619_p2), %vm943_vm3, %v944_v6, 0  ;;  %v2965_v40 = vld [vmem:[%s3842_s10 + $0x8] sm:$0xff] (!%p619_p2)   ;;  %v2966_v41 = vld [vmem:[%s3842_s10 + $0x10] sm:$0xff] (!%p619_p2)   ;;  %v914_v59 = vshrl.u32 (!%p619_p2), %v913_v55, 7 }
   0xe   : > { %2785 = vmatpush3.bf16.msra.mxu1 (!%p619_p2), %v2964_v7  ;;  %v947_v14 = vand.u32 (!%p619_p2), %v3298_v11, %v912_v10  ;;  %v2967_v42 = vld [vmem:[%s3842_s10 + $0x18] sm:$0xff] (!%p619_p2)   ;;  %v2968_v43 = vld [vmem:[%s3842_s10 + $0x20] sm:$0xff] (!%p619_p2)   ;;  %v2969_v44 = vld [vmem:[%s3842_s10 + $0x28] sm:$0xff] (!%p619_p2)   ;;  %s3861_s2 = sld [smem:[#allocation4_spill]] (!%p619_p2)  ;;  %vm2362_vm5 = vcmask (!%p619_p2), 7168   ;;  %vm2401_vm6 = vcmask (!%p619_p2), 253952  }
   0xf   : > { %2786 = vmatprep.subr.bf16.mxu1 (!%p619_p2), %v2965_v40  ;;  %v2970_v45 = vld [vmem:[%s3842_s10 + $0x30] sm:$0xff] (!%p619_p2)   ;;  %v2971_v46 = vld [vmem:[%s3842_s10 + $0x38] sm:$0xff] (!%p619_p2)   ;;  %v1493_v47 = vld [vmem:[%s3847_s15] sm:$0x3] (!%p619_p2)  ;;  %v915_v61 = vsub.s32 (!%p619_p2), 0, %v914_v59 }
  0x10   : > { %2753 = vmatpush3.bf16.msra.mxu0 (!%p619_p2), %v2961_v3  ;;  %v3357_v48 = vand.u32 (!%p619_p2), %v1493_v47, %v3298_v11  ;;  %v2972_v49 = vld [vmem:[%s3844_s12] sm:$0xff] (!%p619_p2)   ;;  %v2974_v50 = vld [vmem:[%s3844_s12 + $0x8] sm:$0xff] (!%p619_p2)   ;;  %v2976_v51 = vld [vmem:[%s3844_s12 + $0x10] sm:$0xff] (!%p619_p2)  }
  0x11   : > { %2758 = vmatprep.subr.bf16.mxu0 (!%p619_p2), %v3138_v2  ;;  %v2978_v52 = vld [vmem:[%s3844_s12 + $0x18] sm:$0xff] (!%p619_p2)   ;;  %v2980_v53 = vld [vmem:[%s3844_s12 + $0x20] sm:$0xff] (!%p619_p2)   ;;  %v2982_v54 = vld [vmem:[%s3844_s12 + $0x28] sm:$0xff] (!%p619_p2)  }
  0x12   : > { %s3864_s24 = smov (!%p698_p3, %s2569_s24), 1  ;;  %2787 = vmatpush3.bf16.msra.mxu1 %v2965_v40  ;;  %v3386_v5 = vld [vmem:[%s3841_s9] ss:$0 sm:$0xff] }
  0x13   : > { %s3271_s28 = sshll.u32 %s3864_s24, 7  ;;  %s3277_s0 = scalar_lea.vmem %s3858_s30, %s3864_s24  ;;  %2788 = vmatprep.subr.bf16.mxu1 %v2966_v41 }
  0x14   : > { %v763_v8 = vld [vmem:[%s3277_s0] sm:$0x1]  ;;  %s3287_s13 = scalar_lea.vmem %s3859_s25, %s3864_s24  ;;  %s3293_s4 = scalar_lea.vmem %s3860_s27, %s3271_s28 }
  0x15   : > { %v783_v9 = vpack.c.bf16 %v763_v8, %v763_v8  ;;  %v764_v13 = vld [vmem:[%s3287_s13] sm:$0x1]  ;;  %v732_v16 = vld [vmem:[%s3293_s4 + $0x8] sm:$0xff]  ;;  %v733_v19 = vld [vmem:[%s3293_s4 + $0x10] sm:$0xff]  ;;  %s3427_s25 = scalar_lea.vmem %s3861_s2, %s3271_s28 }
  0x16   : > { %v731_v15 = vld [vmem:[%s3293_s4] sm:$0xff]  ;;  %v844_v17 = vpack.c.bf16 %v764_v13, %v764_v13  ;;  %v734_v20 = vld [vmem:[%s3293_s4 + $0x18] sm:$0xff]  ;;  %v736_v22 = vld [vmem:[%s3293_s4 + $0x28] sm:$0xff]  ;;  %2789 = vmatpush3.bf16.msra.mxu1 %v2966_v41 }
  0x17   : > { %2755 = vmatmul.mubr.msk.bf16.vlgmr.msra.gmra.mrb[0].mxu0 %vm800_vm2, %v783_v9  ;;  %v904_v18 = vpack.c.bf16 %v732_v16, %v731_v15  ;;  %v735_v21 = vld [vmem:[%s3293_s4 + $0x20] sm:$0xff]  ;;  %v905_v23 = vpack.c.bf16 %v734_v20, %v733_v19  ;;  %v737_v25 = vld [vmem:[%s3293_s4 + $0x30] sm:$0xff]  ;;  %v738_v26 = vld [vmem:[%s3293_s4 + $0x38] sm:$0xff]  ;;  %2790 = vmatprep.subr.bf16.mxu1 %v2967_v42 }
  0x18   : > { %2759 = vmatpush3.bf16.msra.mxu0 %v2962_v4  ;;  %2762 = vmatprep.mubr.msk.bf16.mxu0 %vm3139_vm0, %v3138_v2  ;;  %v906_v24 = vpack.c.bf16 %v736_v22, %v735_v21  ;;  %v739_v27 = vld [vmem:[%s3293_s4 + $0x40] sm:$0xff]  ;;  %v740_v28 = vld [vmem:[%s3293_s4 + $0x48] sm:$0xff]  ;;  %v907_v29 = vpack.c.bf16 %v738_v26, %v737_v25  ;;  %v741_v31 = vld [vmem:[%s3293_s4 + $0x50] sm:$0xff] }
  0x19   : > { %2760 = vmatprep.subr.bf16.mxu0 %v3138_v2  ;;  %v908_v30 = vpack.c.bf16 %v740_v28, %v739_v27  ;;  %v742_v32 = vld [vmem:[%s3293_s4 + $0x58] sm:$0xff]  ;;  %v743_v33 = vld [vmem:[%s3293_s4 + $0x60] sm:$0xff]  ;;  %v744_v34 = vld [vmem:[%s3293_s4 + $0x68] sm:$0xff] }
  0x1a   : > { %v909_v35 = vpack.c.bf16 %v742_v32, %v741_v31  ;;  %v910_v36 = vpack.c.bf16 %v744_v34, %v743_v33  ;;  %v745_v37 = vld [vmem:[%s3293_s4 + $0x70] sm:$0xff]  ;;  %v746_v38 = vld [vmem:[%s3293_s4 + $0x78] sm:$0xff]  ;;  %2791 = vmatpush3.bf16.msra.mxu1 %v2967_v42  ;;  %v3403_v31 = vld [vmem:[%s3846_s14] sm:$0xff]  }
  0x1b   : > { %v911_v39 = vpack.c.bf16 %v746_v38, %v745_v37  ;;  %2792 = vmatprep.subr.bf16.mxu1 %v2968_v43 }
  0x1c   : > { %2761 = vmatpush3.bf16.msra.mxu0 %v2963_v12 }
  0x1d   : > { %2766 = vmatprep.subr.bf16.mxu0 %v947_v14 }
  0x1e   : > { %2793 = vmatpush3.bf16.msra.mxu1 %v2968_v43 }
  0x1f   : > { %2763 = vmatmul.mubr.msk.bf16.vlgmr.msra.gmra.mrb[4].mxu0 %vm800_vm2, %v844_v17  ;;  %2794 = vmatprep.subr.bf16.mxu1 %v2969_v44 }
  0x20   : > { %2767 = vmatpush3.bf16.msra.mxu0 %v947_v14  ;;  %2768 = vmatprep.mubr.msk.bf16.mxu0 %vm917_vm4, %v904_v18 }
  0x21   : > { %2816 = vmatprep.subr.bf16.mxu0 %v2972_v49 }
  0x22   : > { %2795 = vmatpush3.bf16.msra.mxu1 %v2969_v44 }
  0x23   : > { %2796 = vmatprep.subr.bf16.mxu1 %v2970_v45 }
  0x26   : > { %2797 = vmatpush3.bf16.msra.mxu1 %v2970_v45 }
  0x27   : > { %2769 = vmatmul.mubr.msk.bf16.vlgmr.msra.gmra.mrb[8].mxu0 %vm917_vm4, %v905_v23  ;;  %2798 = vmatprep.subr.bf16.mxu1 %v2971_v46 }
  0x28   : > { %2772 = vmatprep.mubr.msk.bf16.mxu0 %vm917_vm4, %v906_v24  ;;  %2817 = vmatpush3.bf16.msra.mxu0 %v2972_v49 }
  0x29   : > { %2818 = vmatprep.subr.bf16.mxu0 %v2974_v50 }
  0x2a   : > { %2799 = vmatpush3.bf16.msra.mxu1 %v2971_v46 }
  0x2b   : > { %2848 = vmatprep.subr.bf16.mxu1 %v3357_v48 }
  0x2c   : > { %2819 = vmatpush3.bf16.msra.mxu0 %v2974_v50 }
  0x2d   : > { %2820 = vmatprep.subr.bf16.mxu0 %v2976_v51 }
  0x2f   : > { %2773 = vmatmul.mubr.msk.bf16.gmra.mrb[12].mxu0 %vm917_vm4, %v907_v29 }
  0x30   : > { %2776 = vmatprep.mubr.msk.bf16.mxu0 %vm917_vm4, %v908_v30  ;;  %2821 = vmatpush3.bf16.msra.mxu0 %v2976_v51 }
  0x31   : > { %2822 = vmatprep.subr.bf16.mxu0 %v2978_v52 }
  0x34   : > { %2823 = vmatpush3.bf16.msra.mxu0 %v2978_v52 }
  0x35   : > { %2824 = vmatprep.subr.bf16.mxu0 %v2980_v53 }
  0x37   : > { %2777 = vmatmul.mubr.msk.bf16.gmra.mrb[16].mxu0 %vm917_vm4, %v909_v35 }
  0x38   : > { %2780 = vmatprep.mubr.msk.bf16.mxu0 %vm917_vm4, %v910_v36  ;;  %2825 = vmatpush3.bf16.msra.mxu0 %v2980_v53 }
  0x39   : > { %2826 = vmatprep.subr.bf16.mxu0 %v2982_v54 }
  0x3c   : > { %2827 = vmatpush3.bf16.msra.mxu0 %v2982_v54 }
  0x3f   : > { %2781 = vmatmul.mubr.msk.bf16.gmra.mrb[20].mxu0 %vm917_vm4, %v911_v39 }
  0xea   : > { %v838_v56 = vpop.f32.mrb[0].mxu0 }
  0xeb   : > { %v2756_v57 = vpop.f32.mrb[1].mxu0  ;;  %v3381_v3 = vrot.slane %v838_v56, %v915_v61 }
  0xec   : > { %v841_v58 = vpop.f32.mrb[2].mxu0 }
  0xed   : > { %v2757_v60 = vpop.f32.mrb[3].mxu0 }
  0xf2   : > { %v898_v62 = vpop.f32.mrb[4].mxu0 }
  0xf3   : > { %v3379_v63 = vrot.slane %v898_v62, %v915_v61  ;;  %v2764_v0 = vpop.f32.mrb[5].mxu0 }
  0xf4   : > { %v901_v1 = vpop.f32.mrb[6].mxu0 }
  0xf5   : > { %v2765_v2 = vpop.f32.mrb[7].mxu0 }
  0xfa   : > { %v2770_v4 = vpop.f32.mrb[8].mxu0 }
  0xfb   : > { %v992_v6 = vadd.f32 %v2770_v4, %v3381_v3  ;;  %v983_v7 = vpop.f32.mrb[9].mxu0 }
  0xfc   : > { %v984_v8 = vadd.f32 %v983_v7, %v3381_v3  ;;  %v2771_v9 = vpop.f32.mrb[10].mxu0 }
  0xfd   : > { %v1055_v10 = vadd.f32 %v3386_v5, %v992_v6  ;;  %v995_v11 = vadd.f32 %v2771_v9, %v3381_v3  ;;  %v986_v12 = vpop.f32.mrb[11].mxu0 }
  0xfe   : > { %v987_v13 = vadd.f32 %v986_v12, %v3381_v3  ;;  %v1053_v14 = vadd.f32 %v3386_v5, %v984_v8 }
  0xff   : > { %v1056_v15 = vadd.f32 %v3386_v5, %v995_v11  ;;  %v1071_v17 = vmax.f32 %v1055_v10, 0.0 }
 0x100   : > { %v1054_v16 = vadd.f32 %v3386_v5, %v987_v13  ;;  %v1069_v20 = vmax.f32 %v1053_v14, 0.0  ;;  %v747_v14 = vld [vmem:[%s3427_s25] sm:$0xff] }
 0x101   : > { %v1072_v18 = vmax.f32 %v1056_v15, 0.0  ;;  %v748_v15 = vld [vmem:[%s3427_s25 + $0x8] sm:$0xff] }
 0x102   : > { %v2774_v19 = vpop.f32.mrb[12].mxu0  ;;  %v1070_v21 = vmax.f32 %v1054_v16, 0.0 }
 0x103   : > { %v1008_v22 = vadd.f32 %v2774_v19, %v3381_v3  ;;  %v999_v23 = vpop.f32.mrb[13].mxu0  ;;  %v1086_v24 = vpack.c.bf16 %v1072_v18, %v1071_v17 }
 0x104   : > { %v1000_v25 = vadd.f32 %v999_v23, %v3381_v3  ;;  %v2775_v26 = vpop.f32.mrb[14].mxu0  ;;  %v1085_v27 = vpack.c.bf16 %v1070_v21, %v1069_v20  ;;  %v749_v20 = vld [vmem:[%s3427_s25 + $0x10] sm:$0xff]  ;;  %v751_v21 = vld [vmem:[%s3427_s25 + $0x20] sm:$0xff] }
 0x105   : > { %v1059_v28 = vadd.f32 %v3386_v5, %v1008_v22  ;;  %v1011_v29 = vadd.f32 %v2775_v26, %v3381_v3  ;;  %v1002_v30 = vpop.f32.mrb[15].mxu0  ;;  %v752_v22 = vld [vmem:[%s3427_s25 + $0x28] sm:$0xff]  ;;  %v753_v26 = vld [vmem:[%s3427_s25 + $0x30] sm:$0xff] }
 0x106   : > { %v1057_v32 = vadd.f32 %v3386_v5, %v1000_v25  ;;  %v1003_v33 = vadd.f32 %v1002_v30, %v3381_v3  ;;  %2800 = vmatprep.mubr.bf16.mxu1 %v1085_v27  ;;  %v2975_v25 = vld [vmem:[%s3846_s14 + $0x8] sm:$0xff]   ;;  %v754_v27 = vld [vmem:[%s3427_s25 + $0x38] sm:$0xff] }
 0x107   : > { %v1060_v34 = vadd.f32 %v3386_v5, %v1011_v29  ;;  %2801 = vmatmul.mubr.bf16.vlgmr.msra.gmra.mrb[0].mxu1 %v1086_v24  ;;  %v1075_v36 = vmax.f32 %v1059_v28, 0.0  ;;  %v1487_v24 = vpack.c.bf16 %v752_v22, %v751_v21  ;;  %v2977_v28 = vld [vmem:[%s3846_s14 + $0x10] sm:$0xff]   ;;  %v755_v29 = vld [vmem:[%s3427_s25 + $0x40] sm:$0xff]  ;;  %v756_v30 = vld [vmem:[%s3427_s25 + $0x48] sm:$0xff] }
 0x108   : > { %v1058_v35 = vadd.f32 %v3386_v5, %v1003_v33  ;;  %2849 = vmatpush3.bf16.msra.mxu1 %v3357_v48  ;;  %v1073_v38 = vmax.f32 %v1057_v32, 0.0  ;;  %v1488_v32 = vpack.c.bf16 %v754_v27, %v753_v26  ;;  %v1489_v33 = vpack.c.bf16 %v756_v30, %v755_v29  ;;  %v2991_v22 = vld [vmem:[%s3850_s18 + $0x18] sm:$0xff]   ;;  %v2992_v30 = vld [vmem:[%s3850_s18 + $0x20] sm:$0xff]  }
 0x109   : > { %v1076_v37 = vmax.f32 %v1060_v34, 0.0  ;;  %2866 = vmatprep.subr.bf16.mxu1 %v3403_v31  ;;  %v757_v34 = vld [vmem:[%s3427_s25 + $0x50] sm:$0xff] }
 0x10a   : > { %v1074_v39 = vmax.f32 %v1058_v35, 0.0  ;;  %v2778_v40 = vpop.f32.mrb[16].mxu0  ;;  %v758_v35 = vld [vmem:[%s3427_s25 + $0x58] sm:$0xff] }
 0x10b   : > { %v1024_v41 = vadd.f32 %v2778_v40, %v3381_v3  ;;  %v1015_v42 = vpop.f32.mrb[17].mxu0  ;;  %v1088_v43 = vpack.c.bf16 %v1076_v37, %v1075_v36  ;;  %v2981_v36 = vld [vmem:[%s3846_s14 + $0x20] sm:$0xff]   ;;  %v1490_v37 = vpack.c.bf16 %v758_v35, %v757_v34  ;;  %v760_v40 = vld [vmem:[%s3427_s25 + $0x68] sm:$0xff] }
 0x10c   : > { %v1016_v44 = vadd.f32 %v1015_v42, %v3381_v3  ;;  %v2779_v45 = vpop.f32.mrb[18].mxu0  ;;  %v1087_v46 = vpack.c.bf16 %v1074_v39, %v1073_v38  ;;  %v2983_v38 = vld [vmem:[%s3846_s14 + $0x28] sm:$0xff]   ;;  %v759_v39 = vld [vmem:[%s3427_s25 + $0x60] sm:$0xff]  ;;  %v761_v42 = vld [vmem:[%s3427_s25 + $0x70] sm:$0xff] }
 0x10d   : > { %v1063_v47 = vadd.f32 %v3386_v5, %v1024_v41  ;;  %v1027_v49 = vadd.f32 %v2779_v45, %v3381_v3  ;;  %v1018_v48 = vpop.f32.mrb[19].mxu0  ;;  %v1491_v41 = vpack.c.bf16 %v760_v40, %v759_v39 }
 0x10e   : > { %v1061_v50 = vadd.f32 %v3386_v5, %v1016_v44  ;;  %v1019_v51 = vadd.f32 %v1018_v48, %v3381_v3  ;;  %2804 = vmatprep.mubr.bf16.mxu1 %v1087_v46  ;;  %v2984_v44 = vld [vmem:[%s3844_s12 + $0x30] sm:$0xff]   ;;  %v2988_v48 = vld [vmem:[%s3850_s18] sm:$0xff]  }
 0x10f   : > { %v1064_v52 = vadd.f32 %v3386_v5, %v1027_v49  ;;  %2805 = vmatmul.mubr.bf16.gmra.mrb[4].mxu1 %v1088_v43  ;;  %v1079_v54 = vmax.f32 %v1063_v47, 0.0  ;;  %v762_v43 = vld [vmem:[%s3427_s25 + $0x78] sm:$0xff]  ;;  %v2985_v46 = vld [vmem:[%s3846_s14 + $0x30] sm:$0xff]   ;;  %2828 = vmatprep.subr.bf16.mxu0 %v2984_v44 }
 0x110   : > { %v1062_v53 = vadd.f32 %v3386_v5, %v1019_v51  ;;  %v1077_v57 = vmax.f32 %v1061_v50, 0.0  ;;  %v1492_v45 = vpack.c.bf16 %v762_v43, %v761_v42  ;;  %2829 = vmatpush3.bf16.msra.mxu0 %v2984_v44  ;;  %v2986_v47 = vld [vmem:[%s3844_s12 + $0x38] sm:$0xff]   ;;  %v3491_v50 = vld [vmem:[%s3843_s11] ss:$0 sm:$0xff] }
 0x111   : > { %v1080_v56 = vmax.f32 %v1064_v52, 0.0  ;;  %v2987_v49 = vld [vmem:[%s3846_s14 + $0x38] sm:$0xff]   ;;  %2830 = vmatprep.subr.bf16.mxu0 %v2986_v47 }
 0x112   : > { %v1078_v58 = vmax.f32 %v1062_v53, 0.0  ;;  %v2782_v59 = vpop.f32.mrb[20].mxu0 }
 0x113   : > { %v1040_v60 = vadd.f32 %v2782_v59, %v3381_v3  ;;  %v1031_v61 = vpop.f32.mrb[21].mxu0  ;;  %v1090_v62 = vpack.c.bf16 %v1080_v56, %v1079_v54 }
 0x114   : > { %v1032_v0 = vadd.f32 %v1031_v61, %v3381_v3  ;;  %v2783_v1 = vpop.f32.mrb[22].mxu0  ;;  %v1089_v2 = vpack.c.bf16 %v1078_v58, %v1077_v57  ;;  %2831 = vmatpush3.bf16.msra.mxu0 %v2986_v47 }
 0x115   : > { %v1067_v4 = vadd.f32 %v3386_v5, %v1040_v60  ;;  %v1043_v6 = vadd.f32 %v2783_v1, %v3381_v3  ;;  %v1034_v7 = vpop.f32.mrb[23].mxu0  ;;  %2898 = vmatprep.subr.bf16.mxu0 %v2988_v48 }
 0x116   : > { %v1065_v8 = vadd.f32 %v3386_v5, %v1032_v0  ;;  %v1035_v9 = vadd.f32 %v1034_v7, %v3381_v3  ;;  %2808 = vmatprep.mubr.bf16.mxu1 %v1089_v2  ;;  %v1485_v3 = vpack.c.bf16 %v748_v15, %v747_v14 }
 0x117   : > { %v1068_v10 = vadd.f32 %v3386_v5, %v1043_v6  ;;  %2809 = vmatmul.mubr.bf16.gmra.mrb[8].mxu1 %v1090_v62  ;;  %v1083_v12 = vmax.f32 %v1067_v4, 0.0 }
 0x118   : > { %v1066_v11 = vadd.f32 %v3386_v5, %v1035_v9  ;;  %v1081_v16 = vmax.f32 %v1065_v8, 0.0  ;;  %v750_v5 = vld [vmem:[%s3427_s25 + $0x18] sm:$0xff]  ;;  %v2989_v8 = vld [vmem:[%s3850_s18 + $0x8] sm:$0xff]   ;;  %s3862_s25 = sld [smem:[#allocation7_spill]] }
 0x119   : > { %v1084_v13 = vmax.f32 %v1068_v10, 0.0  ;;  %v1486_v23 = vpack.c.bf16 %v750_v5, %v749_v20 }
 0x11a   : > { %v1082_v17 = vmax.f32 %v1066_v11, 0.0 }
 0x11b   : > { %v1092_v18 = vpack.c.bf16 %v1084_v13, %v1083_v12 }
 0x11c   : > { %v1091_v19 = vpack.c.bf16 %v1082_v17, %v1081_v16  ;;  %v2990_v16 = vld [vmem:[%s3850_s18 + $0x10] sm:$0xff]  }
 0x11e   : > { %2812 = vmatprep.mubr.bf16.mxu1 %v1091_v19  ;;  %s3536_s21 = scalar_lea.vmem %s3862_s25, %s3271_s28  ;;  %s2580_s28 = sshll.u32 %s3864_s24, 3 }
 0x11f   : > { %2813 = vmatmul.mubr.bf16.gmra.mrb[12].mxu1 %v1092_v18  ;;  %s726_s26 = scalar_lea.vmem %s3838_s6, %s2580_s28  ;;  %s722_s30 = scalar_lea.vmem %s3837_s5, %s2580_s28 }
 0x120   : > { %2850 = vmatprep.mubr.msk.bf16.mxu1 %vm917_vm4, %v1485_v3 }
 0x127   : > { %2851 = vmatmul.mubr.msk.bf16.vlgmr.msra.gmra.mrb[16].mxu1 %vm917_vm4, %v1486_v23 }
 0x128   : > { %2867 = vmatpush3.bf16.msra.mxu1 %v3403_v31  ;;  %2854 = vmatprep.mubr.msk.bf16.mxu1 %vm917_vm4, %v1487_v24  ;;  %v2979_v31 = vld [vmem:[%s3846_s14 + $0x18] sm:$0xff]  }
 0x129   : > { %2868 = vmatprep.subr.bf16.mxu1 %v2975_v25 }
 0x12c   : > { %2869 = vmatpush3.bf16.msra.mxu1 %v2975_v25 }
 0x12d   : > { %2870 = vmatprep.subr.bf16.mxu1 %v2977_v28 }
 0x12f   : > { %2855 = vmatmul.mubr.msk.bf16.gmra.mrb[20].mxu1 %vm917_vm4, %v1488_v32 }
 0x130   : > { %2871 = vmatpush3.bf16.msra.mxu1 %v2977_v28  ;;  %2858 = vmatprep.mubr.msk.bf16.mxu1 %vm917_vm4, %v1489_v33 }
 0x131   : > { %2872 = vmatprep.subr.bf16.mxu1 %v2979_v31 }
 0x134   : > { %2873 = vmatpush3.bf16.msra.mxu1 %v2979_v31 }
 0x135   : > { %2874 = vmatprep.subr.bf16.mxu1 %v2981_v36 }
 0x137   : > { %2859 = vmatmul.mubr.msk.bf16.gmra.mrb[24].mxu1 %vm917_vm4, %v1490_v37 }
 0x138   : > { %2875 = vmatpush3.bf16.msra.mxu1 %v2981_v36  ;;  %2862 = vmatprep.mubr.msk.bf16.mxu1 %vm917_vm4, %v1491_v41 }
 0x139   : > { %2876 = vmatprep.subr.bf16.mxu1 %v2983_v38 }
 0x13c   : > { %2877 = vmatpush3.bf16.msra.mxu1 %v2983_v38 }
 0x13d   : > { %2878 = vmatprep.subr.bf16.mxu1 %v2985_v46 }
 0x13f   : > { %2863 = vmatmul.mubr.msk.bf16.gmra.mrb[28].mxu1 %vm917_vm4, %v1492_v45 }
 0x140   : > { %2879 = vmatpush3.bf16.msra.mxu1 %v2985_v46 }
 0x141   : > { %2880 = vmatprep.subr.bf16.mxu1 %v2987_v49 }
 0x144   : > { %2881 = vmatpush3.bf16.msra.mxu1 %v2987_v49 }
 0x1da   : > { %v2802_v51 = vpop.f32.mrb[0].mxu1 }
 0x1db   : > { %v1207_v52 = vadd.f32 %v2802_v51, %v3491_v50  ;;  %v1198_v53 = vpop.f32.mrb[1].mxu1  ;;  %v2995_v51 = vld [vmem:[%s3850_s18 + $0x38] sm:$0xff]  }
 0x1dc   : > { %v1199_v54 = vadd.f32 %v3491_v50, %v1198_v53  ;;  %v2803_v56 = vpop.f32.mrb[2].mxu1  ;;  %v3530_v53 = vld [vmem:[#allocation2] ss:$0 sm:$0xff] }
 0x1dd   : > { %v1210_v57 = vadd.f32 %v2803_v56, %v3491_v50  ;;  %v1201_v58 = vpop.f32.mrb[3].mxu1  ;;  %v1263_v60 = vmax.f32 %v1207_v52, 0.0  ;;  %v3141_v52 = vmov 0  }
 0x1de   : > { %v1202_v59 = vadd.f32 %v3491_v50, %v1201_v58  ;;  %v1261_v62 = vmax.f32 %v1199_v54, 0.0  ;;  %2958 = vset.pattern.permute.xlu0 %v3141_v52  ;;  %2959 = vset.pattern.permute.xlu1 %v3141_v52 }
 0x1df   : > { %v1264_v61 = vmax.f32 %v1210_v57, 0.0  ;;  %v3541_v57 = vld [vmem:[%s3849_s17] ss:$0 sm:$0xff] }
 0x1e0   : > { %v1262_v0 = vmax.f32 %v1202_v59, 0.0 }
 0x1e1   : > { %v1278_v1 = vpack.c.bf16 %v1264_v61, %v1263_v60 }
 0x1e2   : > { %v1277_v2 = vpack.c.bf16 %v1262_v0, %v1261_v62  ;;  %v2806_v4 = vpop.f32.mrb[4].mxu1  ;;  %v767_v62 = vld [vmem:[%s3536_s21 + $0x10] sm:$0xff] }
 0x1e3   : > { %v1223_v6 = vadd.f32 %v2806_v4, %v3491_v50  ;;  %v1214_v7 = vpop.f32.mrb[5].mxu1 }
 0x1e4   : > { %v1215_v9 = vadd.f32 %v3491_v50, %v1214_v7  ;;  %v2807_v10 = vpop.f32.mrb[6].mxu1  ;;  %2832 = vmatprep.mubr.bf16.mxu0 %v1277_v2  ;;  %2882 = vmatprep.mubr.bf16.mxu1 %v1277_v2 }
 0x1e5   : > { %v1226_v11 = vadd.f32 %v2807_v10, %v3491_v50  ;;  %v1217_v12 = vpop.f32.mrb[7].mxu1  ;;  %2833 = vmatmul.mubr.bf16.vlgmr.msra.gmra.mrb[24].mxu0 %v1278_v1  ;;  %2883 = vmatmul.mubr.bf16.vlgmr.msra.gmra.mrb[16].mxu1 %v1278_v1  ;;  %v1267_v14 = vmax.f32 %v1223_v6, 0.0 }
 0x1e6   : > { %v1218_v13 = vadd.f32 %v3491_v50, %v1217_v12  ;;  %2899 = vmatpush3.bf16.msra.mxu0 %v2988_v48  ;;  %v1265_v17 = vmax.f32 %v1215_v9, 0.0  ;;  %v2993_v48 = vld [vmem:[%s3850_s18 + $0x28] sm:$0xff]  }
 0x1e7   : > { %v1268_v15 = vmax.f32 %v1226_v11, 0.0  ;;  %2900 = vmatprep.subr.bf16.mxu0 %v2989_v8 }
 0x1e8   : > { %v1266_v18 = vmax.f32 %v1218_v13, 0.0 }
 0x1e9   : > { %v1280_v19 = vpack.c.bf16 %v1268_v15, %v1267_v14  ;;  %v768_v15 = vld [vmem:[%s3536_s21 + $0x18] sm:$0xff] }
 0x1ea   : > { %v1279_v3 = vpack.c.bf16 %v1266_v18, %v1265_v17  ;;  %v2810_v20 = vpop.f32.mrb[8].mxu1  ;;  %2901 = vmatpush3.bf16.msra.mxu0 %v2989_v8  ;;  %v765_v8 = vld [vmem:[%s3536_s21] sm:$0xff] }
 0x1eb   : > { %v1239_v5 = vadd.f32 %v2810_v20, %v3491_v50  ;;  %v1230_v21 = vpop.f32.mrb[9].mxu1  ;;  %2902 = vmatprep.subr.bf16.mxu0 %v2990_v16  ;;  %v766_v20 = vld [vmem:[%s3536_s21 + $0x8] sm:$0xff] }
 0x1ec   : > { %v1231_v23 = vadd.f32 %v3491_v50, %v1230_v21  ;;  %v2811_v24 = vpop.f32.mrb[10].mxu1  ;;  %2836 = vmatprep.mubr.bf16.mxu0 %v1279_v3  ;;  %2886 = vmatprep.mubr.bf16.mxu1 %v1279_v3 }
 0x1ed   : > { %v1242_v25 = vadd.f32 %v2811_v24, %v3491_v50  ;;  %v1233_v26 = vpop.f32.mrb[11].mxu1  ;;  %2837 = vmatmul.mubr.bf16.gmra.mrb[28].mxu0 %v1280_v19  ;;  %2887 = vmatmul.mubr.bf16.gmra.mrb[20].mxu1 %v1280_v19  ;;  %v1271_v28 = vmax.f32 %v1239_v5, 0.0 }
 0x1ee   : > { %v1234_v27 = vadd.f32 %v3491_v50, %v1233_v26  ;;  %2903 = vmatpush3.bf16.msra.mxu0 %v2990_v16  ;;  %v1269_v32 = vmax.f32 %v1231_v23, 0.0 }
 0x1ef   : > { %v1272_v29 = vmax.f32 %v1242_v25, 0.0  ;;  %2904 = vmatprep.subr.bf16.mxu0 %v2991_v22 }
 0x1f0   : > { %v1270_v33 = vmax.f32 %v1234_v27, 0.0 }
 0x1f1   : > { %v1282_v31 = vpack.c.bf16 %v1272_v29, %v1271_v28 }
 0x1f2   : > { %v1281_v34 = vpack.c.bf16 %v1270_v33, %v1269_v32  ;;  %v2814_v35 = vpop.f32.mrb[12].mxu1  ;;  %2905 = vmatpush3.bf16.msra.mxu0 %v2991_v22 }
 0x1f3   : > { %v1255_v36 = vadd.f32 %v2814_v35, %v3491_v50  ;;  %v1246_v37 = vpop.f32.mrb[13].mxu1  ;;  %2906 = vmatprep.subr.bf16.mxu0 %v2992_v30 }
 0x1f4   : > { %v1247_v38 = vadd.f32 %v3491_v50, %v1246_v37  ;;  %v2815_v39 = vpop.f32.mrb[14].mxu1  ;;  %2840 = vmatprep.mubr.bf16.mxu0 %v1281_v34  ;;  %2890 = vmatprep.mubr.bf16.mxu1 %v1281_v34 }
 0x1f5   : > { %v1258_v40 = vadd.f32 %v2815_v39, %v3491_v50  ;;  %v1249_v41 = vpop.f32.mrb[15].mxu1  ;;  %2841 = vmatmul.mubr.bf16.gmra.mrb[32].mxu0 %v1282_v31  ;;  %2891 = vmatmul.mubr.bf16.gmra.mrb[24].mxu1 %v1282_v31  ;;  %v1275_v43 = vmax.f32 %v1255_v36, 0.0 }
 0x1f6   : > { %v1250_v42 = vadd.f32 %v3491_v50, %v1249_v41  ;;  %2907 = vmatpush3.bf16.msra.mxu0 %v2992_v30  ;;  %v1273_v45 = vmax.f32 %v1247_v38, 0.0  ;;  %v2994_v50 = vld [vmem:[%s3850_s18 + $0x30] sm:$0xff]  }
 0x1f7   : > { %v1276_v44 = vmax.f32 %v1258_v40, 0.0  ;;  %2908 = vmatprep.subr.bf16.mxu0 %v2993_v48 }
 0x1f8   : > { %v1274_v46 = vmax.f32 %v1250_v42, 0.0  ;;  %v771_v42 = vld [vmem:[%s3536_s21 + $0x30] sm:$0xff] }
 0x1f9   : > { %v1284_v47 = vpack.c.bf16 %v1276_v44, %v1275_v43 }
 0x1fa   : > { %v1283_v49 = vpack.c.bf16 %v1274_v46, %v1273_v45  ;;  %2909 = vmatpush3.bf16.msra.mxu0 %v2993_v48 }
 0x1fb   : > { %2910 = vmatprep.subr.bf16.mxu0 %v2994_v50 }
 0x1fc   : > { %2844 = vmatprep.mubr.bf16.mxu0 %v1283_v49  ;;  %2894 = vmatprep.mubr.bf16.mxu1 %v1283_v49 }
 0x1fd   : > { %2845 = vmatmul.mubr.bf16.gmra.mrb[36].mxu0 %v1284_v47  ;;  %2895 = vmatmul.mubr.bf16.gmra.mrb[28].mxu1 %v1284_v47 }
 0x1fe   : > { %2911 = vmatpush3.bf16.msra.mxu0 %v2994_v50 }
 0x1ff   : > { %2912 = vmatprep.subr.bf16.mxu0 %v2995_v51 }
 0x202   : > { %2913 = vmatpush3.bf16.msra.mxu0 %v2995_v51 }
 0x2b8   : > { %v2834_v54 = vpop.f32.mrb[24].mxu0  ;;  %v2884_v56 = vpop.f32.mrb[16].mxu1 }
 0x2b9   : > { %v1399_v58 = vadd.f32 %v2834_v54, %v3530_v53  ;;  %v1769_v59 = vadd.f32 %v2884_v56, %v3379_v63  ;;  %v1390_v60 = vpop.f32.mrb[25].mxu0  ;;  %v1700_v61 = vpop.f32.mrb[17].mxu1  ;;  %v769_v56 = vld [vmem:[%s3536_s21 + $0x20] sm:$0xff] }
 0x2ba   : > { %v1391_v0 = vadd.f32 %v3530_v53, %v1390_v60  ;;  %v1767_v1 = vadd.f32 %v3379_v63, %v1700_v61  ;;  %v2835_v2 = vpop.f32.mrb[26].mxu0  ;;  %v2885_v4 = vpop.f32.mrb[18].mxu1 }
 0x2bb   : > { %v1455_v6 = vmax.f32 %v1399_v58, 0.0  ;;  %v1792_v7 = vadd.f32 %v3541_v57, %v1769_v59  ;;  %v1402_v9 = vadd.f32 %v2835_v2, %v3530_v53  ;;  %v1770_v10 = vadd.f32 %v2885_v4, %v3379_v63  ;;  %v1393_v11 = vpop.f32.mrb[27].mxu0  ;;  %v1703_v12 = vpop.f32.mrb[19].mxu1 }
 0x2bc   : > { %v1453_v13 = vmax.f32 %v1391_v0, 0.0  ;;  %v3553_v14 = vadd.f32 %v3541_v57, %v1767_v1  ;;  %v1394_v16 = vadd.f32 %v3530_v53, %v1393_v11  ;;  %v1768_v17 = vadd.f32 %v3379_v63, %v1703_v12 }
 0x2bd   : > { %v2124_v18 = vmul.f32 %v1455_v6, %v767_v62  ;;  %v1456_v19 = vmax.f32 %v1402_v9, 0.0  ;;  %v1793_v3 = vadd.f32 %v3541_v57, %v1770_v10  ;;  %v1808_v24 = vmax.f32 %v1792_v7, 0.0 }
 0x2be   : > { %v2094_v5 = vmul.f32 %v1453_v13, %v765_v8  ;;  %v1454_v21 = vmax.f32 %v1394_v16, 0.0  ;;  %v3561_v22 = vadd.f32 %v3541_v57, %v1768_v17  ;;  %v1806_v28 = vmax.f32 %v3553_v14, 0.0  ;;  %v772_v17 = vld [vmem:[%s3536_s21 + $0x38] sm:$0xff]  ;;  %v775_v14 = vld [vmem:[%s3536_s21 + $0x50] sm:$0xff] }
 0x2bf   : > { %v2128_v23 = vsub.f32 0.0, %v2124_v18  ;;  %v2141_v25 = vmul.f32 %v1456_v19, %v768_v15  ;;  %v1809_v26 = vmax.f32 %v1793_v3, 0.0 }
 0x2c0   : > { %v2095_v27 = vsub.f32 0.0, %v2094_v5  ;;  %v2107_v29 = vmul.f32 %v1454_v21, %v766_v20  ;;  %v1807_v30 = vmax.f32 %v3561_v22, 0.0  ;;  %v2838_v32 = vpop.f32.mrb[28].mxu0  ;;  %v2888_v33 = vpop.f32.mrb[20].mxu1 }
 0x2c1   : > { %v2129_v31 = vmul.f32 1.442695, %v2128_v23  ;;  %v2145_v34 = vsub.f32 0.0, %v2141_v25  ;;  %v3565_v35 = vpack.c.bf16 %v1809_v26, %v1808_v24  ;;  %v1415_v36 = vadd.f32 %v2838_v32, %v3530_v53  ;;  %v1406_v37 = vpop.f32.mrb[29].mxu0  ;;  %v1716_v38 = vpop.f32.mrb[21].mxu1 }
 0x2c2   : > { %v2096_v39 = vmul.f32 1.442695, %v2095_v27  ;;  %v2111_v40 = vsub.f32 0.0, %v2107_v29  ;;  %v2123_v41 = vadd.f32 %v2107_v29, %v2094_v5  ;;  %v1773_v43 = vadd.f32 %v2888_v33, %v3379_v63  ;;  %v2839_v44 = vpop.f32.mrb[30].mxu0  ;;  %v2889_v45 = vpop.f32.mrb[22].mxu1 }
 0x2c3   : > { %2996 = vpow2.f32 %v2129_v31  ;;  %v2146_v46 = vmul.f32 1.442695, %v2145_v34  ;;  %v1459_v47 = vmax.f32 %v1415_v36, 0.0  ;;  %v1407_v49 = vadd.f32 %v3530_v53, %v1406_v37  ;;  %v1409_v48 = vpop.f32.mrb[31].mxu0  ;;  %v1719_v50 = vpop.f32.mrb[23].mxu1  ;;  %v770_v37 = vld [vmem:[%s3536_s21 + $0x28] sm:$0xff] }
 0x2c4   : > { %2998 = vpow2.f32 %v2096_v39  ;;  %v2112_v51 = vmul.f32 1.442695, %v2111_v40  ;;  %v2125_v52 = vsub.f32 0.0, %v2123_v41  ;;  %v2140_v54 = vadd.f32 %v2124_v18, %v2123_v41 }
 0x2c5   : > { %3000 = vpow2.f32 %v2146_v46  ;;  %v3572_v58 = vmul.f32 %v1459_v47, %v771_v42  ;;  %v3575_v59 = vadd.f32 %v3541_v57, %v1773_v43  ;;  %v1457_v60 = vmax.f32 %v1407_v49, 0.0 }
 0x2c6   : > { %3002 = vpow2.f32 %v2112_v51  ;;  %v2126_v61 = vmul.f32 1.442695, %v2125_v52  ;;  %v2142_v62 = vsub.f32 0.0, %v2140_v54  ;;  %v2157_v0 = vadd.f32 %v2141_v25, %v2140_v54 }
 0x2c7   : > { %v2196_v1 = vsub.f32 0.0, %v3572_v58  ;;  %v1812_v2 = vmax.f32 %v3575_v59, 0.0  ;;  %v2158_v4 = vmul.f32 %v1457_v60, %v769_v56  ;;  %v1771_v6 = vadd.f32 %v3379_v63, %v1716_v38 }
 0x2c8   : > { %3004 = vpow2.f32 %v2126_v61  ;;  %v2143_v7 = vmul.f32 1.442695, %v2142_v62  ;;  %v2159_v8 = vsub.f32 0.0, %v2157_v0  ;;  %v1418_v9 = vadd.f32 %v2839_v44, %v3530_v53  ;;  %v2842_v10 = vpop.f32.mrb[32].mxu0  ;;  %v2892_v11 = vpop.f32.mrb[24].mxu1 }
 0x2c9   : > { %v2197_v12 = vmul.f32 1.442695, %v2196_v1  ;;  %v2162_v13 = vsub.f32 0.0, %v2158_v4  ;;  %v2174_v15 = vadd.f32 %v2158_v4, %v2157_v0  ;;  %v3582_v16 = vadd.f32 %v3541_v57, %v1771_v6  ;;  %v1422_v18 = vpop.f32.mrb[33].mxu0  ;;  %v1732_v19 = vpop.f32.mrb[25].mxu1 }
 0x2ca   : > { %3006 = vpow2.f32 %v2143_v7  ;;  %v2160_v3 = vmul.f32 1.442695, %v2159_v8  ;;  %v1460_v20 = vmax.f32 %v1418_v9, 0.0  ;;  %v1774_v5 = vadd.f32 %v2889_v45, %v3379_v63  ;;  %v2843_v21 = vpop.f32.mrb[34].mxu0  ;;  %v3586_v23 = vpop.f32.mrb[26].mxu1  ;;  %v776_v8 = vld [vmem:[%s3536_s21 + $0x58] sm:$0xff] }
 0x2cb   : > { %3008 = vpow2.f32 %v2197_v12  ;;  %v2163_v24 = vmul.f32 1.442695, %v2162_v13  ;;  %v2176_v25 = vsub.f32 0.0, %v2174_v15  ;;  %v1810_v26 = vmax.f32 %v3582_v16, 0.0  ;;  %v3589_v27 = vpop.f32.mrb[35].mxu0  ;;  %v3591_v29 = vpop.f32.mrb[27].mxu1 }
 0x2cc   : > { %3010 = vpow2.f32 %v2160_v3  ;;  %v3593_v32 = vmul.f32 %v1460_v20, %v772_v17  ;;  %v3596_v33 = vadd.f32 %v3541_v57, %v1774_v5  ;;  %v1410_v31 = vadd.f32 %v3530_v53, %v1409_v48 }
 0x2cd   : > { %v3599_v34 = vpop.eup %2996  ;;  %3012 = vpow2.f32 %v2163_v24  ;;  %v2177_v36 = vmul.f32 1.442695, %v2176_v25  ;;  %v1772_v38 = vadd.f32 %v3379_v63, %v1719_v50  ;;  %v1822_v39 = vpack.c.bf16 %v1807_v30, %v1806_v28  ;;  %v773_v50 = vld [vmem:[%s3536_s21 + $0x40] sm:$0xff] }
 0x2ce   : > { %v3607_v40 = vpop.eup %2998  ;;  %v2213_v41 = vsub.f32 0.0, %v3593_v32  ;;  %v1813_v42 = vmax.f32 %v3596_v33, 0.0  ;;  %v1458_v43 = vmax.f32 %v1410_v31, 0.0  ;;  %v1431_v44 = vadd.f32 %v2842_v10, %v3530_v53 }
 0x2cf   : > { %v3612_v45 = vpop.eup %3000  ;;  %3014 = vpow2.f32 %v2177_v36  ;;  %v3615_v46 = vadd.f32 %v3541_v57, %v1772_v38  ;;  %2914 = vmatprep.mubr.bf16.mxu0 %v1822_v39  ;;  %v1777_v22 = vadd.f32 %v2892_v11, %v3379_v63  ;;  %v1423_v28 = vadd.f32 %v3530_v53, %v1422_v18 }
 0x2d0   : > { %v3620_v30 = vpop.eup %3002  ;;  %v2214_v47 = vmul.f32 1.442695, %v2213_v41  ;;  %v2175_v49 = vmul.f32 %v1458_v43, %v770_v37  ;;  %2915 = vmatmul.mubr.bf16.vlgmr.msra.gmra.mrb[40].mxu0 %v3565_v35  ;;  %v1463_v48 = vmax.f32 %v1431_v44, 0.0  ;;  %v1775_v51 = vadd.f32 %v3379_v63, %v1732_v19  ;;  %v3625_v52 = vpop.f32.mrb[36].mxu0 }
 0x2d1   : > { %v3627_v54 = vpop.f32.mrb[28].mxu1  ;;  %v1811_v56 = vmax.f32 %v3615_v46, 0.0  ;;  %v3631_v60 = vadd.f32 %v3541_v57, %v1777_v22  ;;  %v1461_v61 = vmax.f32 %v1423_v28, 0.0  ;;  %v1434_v62 = vadd.f32 %v2843_v21, %v3530_v53  ;;  %v3634_v0 = vpop.f32.mrb[37].mxu0 }
 0x2d2   : > { %v3636_v35 = vpop.f32.mrb[29].mxu1  ;;  %v3638_v1 = vpop.eup %3004  ;;  %3016 = vpow2.f32 %v2214_v47  ;;  %v2179_v4 = vsub.f32 0.0, %v2175_v49  ;;  %v2191_v6 = vadd.f32 %v2175_v49, %v2174_v15  ;;  %v3640_v7 = vmul.f32 %v1463_v48, %v775_v14 }
 0x2d3   : > { %v3643_v9 = vpop.f32.mrb[38].mxu0  ;;  %v3645_v10 = vpop.f32.mrb[30].mxu1  ;;  %v1816_v11 = vmax.f32 %v3631_v60, 0.0  ;;  %v2226_v12 = vmul.f32 %v1461_v61, %v773_v50  ;;  %v3649_v13 = vadd.f32 %v3541_v57, %v1775_v51  ;;  %v1464_v17 = vmax.f32 %v1434_v62, 0.0  ;;  %v774_v51 = vld [vmem:[%s3536_s21 + $0x48] sm:$0xff] }
 0x2d4   : > { %v3651_v18 = vpop.f32.mrb[39].mxu0  ;;  %v3653_v19 = vpop.f32.mrb[31].mxu1  ;;  %v2180_v15 = vmul.f32 1.442695, %v2179_v4  ;;  %v2193_v20 = vsub.f32 0.0, %v2191_v6  ;;  %v2208_v5 = vadd.f32 %v3572_v58, %v2191_v6  ;;  %v2264_v21 = vsub.f32 0.0, %v3640_v7 }
 0x2d5   : > { %v3655_v3 = vpop.eup %3006  ;;  %v2230_v25 = vsub.f32 0.0, %v2226_v12  ;;  %v1814_v31 = vmax.f32 %v3649_v13, 0.0  ;;  %v3662_v36 = vmul.f32 %v1464_v17, %v776_v8  ;;  %v1778_v37 = vadd.f32 %v3586_v23, %v3379_v63 }
 0x2d6   : > { %v3659_v24 = vpop.eup %3008  ;;  %3018 = vpow2.f32 %v2180_v15  ;;  %v2194_v39 = vmul.f32 1.442695, %v2193_v20  ;;  %v2210_v41 = vsub.f32 0.0, %v2208_v5  ;;  %v2265_v43 = vmul.f32 1.442695, %v2264_v21  ;;  %v779_v21 = vld [vmem:[%s3536_s21 + $0x70] sm:$0xff] }
 0x2d7   : > { %v3666_v38 = vpop.eup %3010  ;;  %v2225_v44 = vadd.f32 %v3593_v32, %v2208_v5  ;;  %v2231_v46 = vmul.f32 1.442695, %v2230_v25  ;;  %v2281_v14 = vsub.f32 0.0, %v3662_v36  ;;  %v3673_v22 = vadd.f32 %v3541_v57, %v1778_v37 }
 0x2d8   : > { %v3668_v58 = vpop.eup %3012  ;;  %3020 = vpow2.f32 %v2194_v39  ;;  %v2211_v28 = vmul.f32 1.442695, %v2210_v41  ;;  %v1426_v23 = vadd.f32 %v3530_v53, %v3589_v27  ;;  %v1776_v47 = vadd.f32 %v3379_v63, %v3591_v29  ;;  %v777_v41 = vld [vmem:[%s3536_s21 + $0x60] sm:$0xff] }
 0x2d9   : > { %v3679_v49 = vpop.eup %3014  ;;  %3022 = vpow2.f32 %v2265_v43  ;;  %v2227_v48 = vsub.f32 0.0, %v2225_v44  ;;  %v2242_v50 = vadd.f32 %v2226_v12, %v2225_v44  ;;  %v2282_v32 = vmul.f32 1.442695, %v2281_v14 }
 0x2da   : > { %3024 = vpow2.f32 %v2211_v28  ;;  %v1817_v61 = vmax.f32 %v3673_v22, 0.0  ;;  %v1462_v62 = vmax.f32 %v1426_v23, 0.0  ;;  %v3684_v4 = vadd.f32 %v3541_v57, %v1776_v47  ;;  %v780_v47 = vld [vmem:[%s3536_s21 + $0x78] sm:$0xff] }
 0x2db   : > { %v2228_v6 = vmul.f32 1.442695, %v2227_v48  ;;  %3026 = vpow2.f32 %v2231_v46  ;;  %v2244_v27 = vsub.f32 0.0, %v2242_v50  ;;  %v1824_v29 = vpack.c.bf16 %v1811_v56, %v1810_v26 }
 0x2dc   : > { %v3688_v8 = vpop.eup %3016  ;;  %3028 = vpow2.f32 %v2282_v32  ;;  %v2243_v12 = vmul.f32 %v1462_v62, %v774_v51  ;;  %v1815_v17 = vmax.f32 %v3684_v4, 0.0  ;;  %v1825_v15 = vpack.c.bf16 %v1813_v42, %v1812_v2 }
 0x2dd   : > { %3030 = vpow2.f32 %v2228_v6  ;;  %v2245_v20 = vmul.f32 1.442695, %v2244_v27  ;;  %2918 = vmatprep.mubr.bf16.mxu0 %v1824_v29  ;;  %v1447_v5 = vadd.f32 %v3625_v52, %v3530_v53  ;;  %v1781_v16 = vadd.f32 %v3627_v54, %v3379_v63 }
 0x2de   : > { %v2247_v26 = vsub.f32 0.0, %v2243_v12  ;;  %v2259_v56 = vadd.f32 %v2243_v12, %v2242_v50  ;;  %2919 = vmatmul.mubr.bf16.gmra.mrb[44].mxu0 %v1825_v15  ;;  %v1439_v59 = vadd.f32 %v3530_v53, %v3634_v0  ;;  %v1779_v2 = vadd.f32 %v3379_v63, %v3636_v35 }
 0x2df   : > { %3032 = vpow2.f32 %v2245_v20  ;;  %v1467_v33 = vmax.f32 %v1447_v5, 0.0  ;;  %v3705_v42 = vadd.f32 %v3541_v57, %v1781_v16  ;;  %v2098_v52 = vsub.f32 1.0, %v3607_v40 }
 0x2e0   : > { %v3708_v25 = vpop.eup %3018  ;;  %v2248_v54 = vmul.f32 1.442695, %v2247_v26  ;;  %v2261_v37 = vsub.f32 0.0, %v2259_v56  ;;  %v2276_v39 = vadd.f32 %v3640_v7, %v2259_v56  ;;  %v1465_v43 = vmax.f32 %v1439_v59, 0.0 }
 0x2e1   : > { %v3712_v0 = vmul.f32 %v1467_v33, %v779_v21  ;;  %v1820_v35 = vmax.f32 %v3705_v42, 0.0  ;;  %v3716_v44 = vadd.f32 %v3541_v57, %v1779_v2  ;;  %2101 = vperm.xlu0 %2958, %v2098_v52   ;;  %v1450_v46 = vadd.f32 %v3643_v9, %v3530_v53  ;;  %v778_v52 = vld [vmem:[%s3536_s21 + $0x68] sm:$0xff]  ;;  %s729_s21 = scalar_lea.vmem %s3852_s20, %s3864_s24 }
 0x2e2   : > { %v3720_v14 = vpop.eup %3020  ;;  %3034 = vpow2.f32 %v2248_v54  ;;  %v2262_v28 = vmul.f32 1.442695, %v2261_v37  ;;  %v2278_v23 = vsub.f32 0.0, %v2276_v39  ;;  %v2293_v7 = vadd.f32 %v3662_v36, %v2276_v39 }
 0x2e3   : > { %v3724_v48 = vpop.eup %3022  ;;  %v2332_v50 = vsub.f32 0.0, %v3712_v0  ;;  %v2294_v32 = vmul.f32 %v1465_v43, %v777_v41  ;;  %v1818_v51 = vmax.f32 %v3716_v44, 0.0  ;;  %v1468_v62 = vmax.f32 %v1450_v46, 0.0 }
 0x2e4   : > { %v3728_v6 = vpop.eup %3024  ;;  %3036 = vpow2.f32 %v2262_v28  ;;  %v2279_v9 = vmul.f32 1.442695, %v2278_v23  ;;  %v2295_v27 = vsub.f32 0.0, %v2293_v7  ;;  %v1782_v29 = vadd.f32 %v3645_v10, %v3379_v63 }
 0x2e5   : > { %v3732_v12 = vpop.eup %3026  ;;  %v2333_v36 = vmul.f32 1.442695, %v2332_v50  ;;  %v2298_v15 = vsub.f32 0.0, %v2294_v32  ;;  %v2310_v20 = vadd.f32 %v2294_v32, %v2293_v7  ;;  %v2345_v5 = vmul.f32 %v1468_v62, %v780_v47 }
 0x2e6   : > { %v3734_v16 = vpop.eup %3028  ;;  %3038 = vpow2.f32 %v2279_v9  ;;  %v2296_v26 = vmul.f32 1.442695, %v2295_v27  ;;  %v1805_v56 = vadd.f32 %v3541_v57, %v1782_v29  ;;  %v1442_v21 = vadd.f32 %v3530_v53, %v3651_v18 }
 0x2e7   : > { %v3031_v59 = vpop.eup %3030  ;;  %3040 = vpow2.f32 %v2333_v36  ;;  %v2299_v2 = vmul.f32 1.442695, %v2298_v15  ;;  %v2312_v10 = vsub.f32 0.0, %v2310_v20  ;;  %v2349_v33 = vsub.f32 0.0, %v2345_v5 }
 0x2e8   : > { %3042 = vpow2.f32 %v2296_v26  ;;  %v1821_v54 = vmax.f32 %v1805_v56, 0.0  ;;  %v1466_v37 = vmax.f32 %v1442_v21, 0.0  ;;  %v1780_v39 = vadd.f32 %v3379_v63, %v3653_v19 }
 0x2e9   : > { %v3033_v41 = vpop.eup %3032  ;;  %3044 = vpow2.f32 %v2299_v2  ;;  %v2313_v43 = vmul.f32 1.442695, %v2312_v10  ;;  %v2350_v44 = vmul.f32 1.442695, %v2349_v33  ;;  %v1826_v53 = vpack.c.bf16 %v1815_v17, %v1814_v31 }
 0x2ea   : > { %v2311_v18 = vmul.f32 %v1466_v37, %v778_v52  ;;  %v1803_v46 = vadd.f32 %v3541_v57, %v1780_v39  ;;  %v1827_v28 = vpack.c.bf16 %v1817_v61, %v1816_v11  ;;  %v2131_v23 = vsub.f32 1.0, %v3599_v34  ;;  %v782_v52 = vld [vmem:[%s726_s26] sm:$0xff] }
 0x2eb   : > { %3046 = vpow2.f32 %v2313_v43  ;;  %2922 = vmatprep.mubr.bf16.mxu0 %v1826_v53  ;;  %v2114_v63 = vsub.f32 1.0, %v3620_v30  ;;  %v2148_v19 = vsub.f32 1.0, %v3612_v45  ;;  %v2165_v13 = vsub.f32 1.0, %v3668_v58 }
 0x2ec   : > { %v3035_v4 = vpop.eup %3034  ;;  %3048 = vpow2.f32 %v2350_v44  ;;  %v2315_v31 = vsub.f32 0.0, %v2311_v18  ;;  %v2327_v17 = vadd.f32 %v2311_v18, %v2310_v20  ;;  %v1819_v57 = vmax.f32 %v1803_v46, 0.0  ;;  %2923 = vmatmul.mubr.bf16.gmra.mrb[48].mxu0 %v1827_v28 }
 0x2ed   : > { %v2132_v60 = vmul.f32 %v3638_v1, %v2131_v23  ;;  %v2115_v11 = vmul.f32 %v3607_v40, %v2114_v63  ;;  %v2149_v34 = vmul.f32 %v3655_v3, %v2148_v19  ;;  %v2166_v22 = vmul.f32 %v3666_v38, %v2165_v13 }
 0x2ee   : > { %v3037_v61 = vpop.eup %3036  ;;  %v2316_v30 = vmul.f32 1.442695, %v2315_v31  ;;  %v2329_v7 = vsub.f32 0.0, %v2327_v17  ;;  %v2344_v45 = vadd.f32 %v3712_v0, %v2327_v17  ;;  %v1828_v58 = vpack.c.bf16 %v1819_v57, %v1818_v51  ;;  %v3128_v31 = vld [vmem:[%s3277_s0] sm:$0x1] }
 0x2ef   : > { %2135 = vperm.xlu1 %2959, %v2132_v60   ;;  %2118 = vperm.xlu0 %2958, %v2115_v11   ;;  %v1829_v47 = vpack.c.bf16 %v1821_v54, %v1820_v35  ;;  %v2182_v50 = vsub.f32 1.0, %v3708_v25  ;;  %v2199_v1 = vsub.f32 1.0, %v3659_v24  ;;  %v2216_v40 = vsub.f32 1.0, %v3688_v8 }
 0x2f0   : > { %v3039_v3 = vpop.eup %3038  ;;  %3050 = vpow2.f32 %v2316_v30  ;;  %v2330_v38 = vmul.f32 1.442695, %v2329_v7  ;;  %v2346_v32 = vsub.f32 0.0, %v2344_v45  ;;  %2926 = vmatprep.mubr.bf16.mxu0 %v1828_v58  ;;  %v2233_v62 = vsub.f32 1.0, %v3732_v12 }
 0x2f1   : > { %v3041_v0 = vpop.eup %3040  ;;  %v2183_v51 = vmul.f32 %v3679_v49, %v2182_v50  ;;  %v2200_v9 = vmul.f32 %v3720_v14, %v2199_v1  ;;  %v2217_v42 = vmul.f32 %v3728_v6, %v2216_v40  ;;  %v2250_v35 = vsub.f32 1.0, %v3035_v4 }
 0x2f2   : > { %v3043_v25 = vpop.eup %3042  ;;  %3052 = vpow2.f32 %v2330_v38  ;;  %v2347_v24 = vmul.f32 1.442695, %v2346_v32  ;;  %v2234_v27 = vmul.f32 %v3031_v59, %v2233_v62  ;;  %v2267_v8 = vsub.f32 1.0, %v3724_v48 }
 0x2f3   : > { %v3045_v29 = vpop.eup %3044  ;;  %2152 = vperm.xlu1 %2959, %v2149_v34   ;;  %2169 = vperm.xlu0 %2958, %v2166_v22   ;;  %v2251_v36 = vmul.f32 %v3033_v41, %v2250_v35  ;;  %v2284_v12 = vsub.f32 1.0, %v3734_v16  ;;  %v2335_v56 = vsub.f32 1.0, %v3041_v0  ;;  %v2386_v37 = vsub.f32 0.0, %v782_v52 }
 0x2f4   : > { %3054 = vpow2.f32 %v2347_v24  ;;  %2927 = vmatmul.mubr.bf16.gmra.mrb[52].mxu0 %v1829_v47  ;;  %v2268_v49 = vmul.f32 %v3037_v61, %v2267_v8  ;;  %v2301_v15 = vsub.f32 1.0, %v3045_v29  ;;  %v3777_v41 = vand.u32 2147483647, %v782_v52  ;;  %v3794_v47 = vld [vmem:[%s3851_s19] ss:$0 sm:$0xff] }
 0x2f5   : > { %v3047_v14 = vpop.eup %3046  ;;  %v2285_v6 = vmul.f32 %v3039_v3, %v2284_v12  ;;  %v2400_v17 = vmul.f32 %v3128_v31, %v3128_v31 }
 0x2f6   : > { %v3049_v20 = vpop.eup %3048  ;;  %v2302_v5 = vmul.f32 %v3043_v25, %v2301_v15  ;;  %v2363_v44 = vsel %vm2362_vm5, %v3777_v41, 0.0 }
 0x2f7   : > { %2186 = vperm.xlu1 %2959, %v2183_v51   ;;  %2203 = vperm.xlu0 %2958, %v2200_v9   ;;  %v2352_v2 = vsub.f32 1.0, %v3049_v20  ;;  %v2364_v53 = vrot.slane %v2363_v44, 4  ;;  %v2402_v11 = vsel %vm2401_vm6, %v2400_v17, 0.0 }
 0x2f9   : > { %v2365_v18 = vadd.f32 %v2364_v53, %v2363_v44 }
 0x2fa   : > { %v3051_v26 = vpop.eup %3050 }
 0x2fb   : > { %2220 = vperm.xlu1 %2959, %v2217_v42   ;;  %2237 = vperm.xlu0 %2958, %v2234_v27   ;;  %v2318_v48 = vsub.f32 1.0, %v3051_v26  ;;  %v2366_v28 = vrot.slane %v2365_v18, 2 }
 0x2fc   : > { %v3053_v21 = vpop.eup %3052 }
 0x2fd   : > { %v2319_v59 = vmul.f32 %v3047_v14, %v2318_v48  ;;  %v2336_v16 = vmul.f32 %v3053_v21, %v2335_v56  ;;  %v2367_v63 = vadd.f32 %v2366_v28, %v2365_v18 }
 0x2fe   : > { %v3055_v10 = vpop.eup %3054 }
 0x2ff   : > { %2254 = vperm.xlu1 %2959, %v2251_v36   ;;  %2271 = vperm.xlu0 %2958, %v2268_v49   ;;  %v2353_v33 = vmul.f32 %v3055_v10, %v2352_v2  ;;  %v2387_v54 = vsub.f32 0.5, %v3055_v10  ;;  %v2368_v13 = vrot.slane %v2367_v63, 1 }
 0x301   : > { %v2388_v39 = vmul.f32 %v2387_v54, %v2386_v37  ;;  %v2369_v57 = vadd.f32 %v2368_v13, %v2367_v63 }
 0x303   : > { %2288 = vperm.xlu1 %2959, %v2285_v6   ;;  %2305 = vperm.xlu0 %2958, %v2302_v5   ;;  %v2389_v43 = vmul.f32 1.442695, %v2388_v39  ;;  %v2370_v34 = vadd.f32 1e-09, %v2369_v57 }
 0x305   : > { %3056 = vpow2.f32 %v2389_v43 }
 0x306   : > { %3058 = vrcp.f32 %v2370_v34 }
 0x307   : > { %2322 = vperm.xlu1 %2959, %v2319_v59   ;;  %2339 = vperm.xlu0 %2958, %v2336_v16  }
 0x30b   : > { %2356 = vperm.xlu1 %2959, %v2353_v33  }
 0x30f   : > { %v3057_v46 = vpop.eup %3056 }
 0x310   : > { %v2391_v23 = vmul.f32 %v3057_v46, %v3777_v41  ;;  %v3785_v45 = vpop.eup %3058 }
 0x312   : > { %v2392_v19 = vsel %vm2362_vm5, %v2391_v23, 0.0 }
 0x313   : > { %v2393_v4 = vrot.slane %v2392_v19, 4 }
 0x315   : > { %v2394_v60 = vadd.f32 %v2393_v4, %v2392_v19 }
 0x317   : > { %v2395_v22 = vrot.slane %v2394_v60, 2 }
 0x319   : > { %v2396_v61 = vadd.f32 %v2395_v22, %v2394_v60 }
 0x31b   : > { %v2397_v30 = vrot.slane %v2396_v61, 1 }
 0x31d   : > { %v2398_v7 = vadd.f32 %v2397_v30, %v2396_v61 }
 0x31f   : > { %v3788_v58 = vmul.f32 %v3785_v45, %v2398_v7 }
 0x32f   : > { %2403 = vadd.xlane.f32.xlu1 %v2402_v11 }
 0x340   : > { %2439 = vperm.xlu1 %2959, %v3788_v58  }
 0x360   : > { %v2102_v10 = vpop.permute.xlu0 %2101 }
 0x36e   : > { %v2136_v52 = vpop.permute.xlu1 %2135  ;;  %v2119_v28 = vpop.permute.xlu0 %2118 }
 0x372   : > { %v2153_v22 = vpop.permute.xlu1 %2152 }
 0x3a3   : > { %v2916_v50 = vpop.f32.mrb[40].mxu0 }
 0x3a4   : > { %v1944_v1 = vadd.f32 %v2916_v50, %v3794_v47  ;;  %v1935_v40 = vpop.f32.mrb[41].mxu0 }
 0x3a5   : > { %v1936_v3 = vadd.f32 %v3794_v47, %v1935_v40  ;;  %v2917_v38 = vpop.f32.mrb[42].mxu0 }
 0x3a6   : > { %v2643_v32 = vmul.f32 -1.442695, %v1944_v1  ;;  %v1947_v62 = vadd.f32 %v2917_v38, %v3794_v47  ;;  %v1938_v0 = vpop.f32.mrb[43].mxu0 }
 0x3a7   : > { %v2641_v51 = vmul.f32 -1.442695, %v1936_v3  ;;  %v1939_v9 = vadd.f32 %v3794_v47, %v1938_v0 }
 0x3a8   : > { %3060 = vpow2.f32 %v2643_v32  ;;  %v2644_v42 = vmul.f32 -1.442695, %v1947_v62 }
 0x3a9   : > { %3062 = vpow2.f32 %v2641_v51  ;;  %v2642_v35 = vmul.f32 -1.442695, %v1939_v9 }
 0x3aa   : > { %3064 = vpow2.f32 %v2644_v42 }
 0x3ab   : > { %3066 = vpow2.f32 %v2642_v35 }
 0x3b1   : > { %v2920_v25 = vpop.f32.mrb[44].mxu0 }
 0x3b2   : > { %v3061_v24 = vpop.eup %3060  ;;  %v1960_v27 = vadd.f32 %v2920_v25, %v3794_v47  ;;  %v1951_v8 = vpop.f32.mrb[45].mxu0 }
 0x3b3   : > { %v3063_v29 = vpop.eup %3062  ;;  %v2048_v36 = vadd.f32 1.0, %v3061_v24  ;;  %v1952_v12 = vadd.f32 %v3794_v47, %v1951_v8  ;;  %v2921_v49 = vpop.f32.mrb[46].mxu0 }
 0x3b4   : > { %v3065_v15 = vpop.eup %3064  ;;  %v2046_v14 = vadd.f32 1.0, %v3063_v29  ;;  %v1963_v6 = vadd.f32 %v2921_v49, %v3794_v47  ;;  %v1954_v20 = vpop.f32.mrb[47].mxu0  ;;  %v2647_v48 = vmul.f32 -1.442695, %v1960_v27 }
 0x3b5   : > { %v3067_v5 = vpop.eup %3066  ;;  %3068 = vrcp.f32 %v2048_v36  ;;  %v2049_v26 = vadd.f32 1.0, %v3065_v15  ;;  %v1955_v56 = vadd.f32 %v3794_v47, %v1954_v20  ;;  %v2645_v59 = vmul.f32 -1.442695, %v1952_v12 }
 0x3b6   : > { %3070 = vrcp.f32 %v2046_v14  ;;  %v2047_v21 = vadd.f32 1.0, %v3067_v5  ;;  %v2648_v16 = vmul.f32 -1.442695, %v1963_v6  ;;  %v2170_v14 = vpop.permute.xlu0 %2169  ;;  %v2187_v5 = vpop.permute.xlu1 %2186 }
 0x3b7   : > { %3072 = vrcp.f32 %v2049_v26  ;;  %v2646_v2 = vmul.f32 -1.442695, %v1955_v56 }
 0x3b8   : > { %3074 = vrcp.f32 %v2047_v21 }
 0x3b9   : > { %3076 = vpow2.f32 %v2647_v48 }
 0x3ba   : > { %3078 = vpow2.f32 %v2645_v59 }
 0x3bb   : > { %3080 = vpow2.f32 %v2648_v16 }
 0x3bc   : > { %3082 = vpow2.f32 %v2646_v2 }
 0x3bf   : > { %v3069_v33 = vpop.eup %3068  ;;  %v2924_v54 = vpop.f32.mrb[48].mxu0 }
 0x3c0   : > { %v3071_v37 = vpop.eup %3070  ;;  %v1976_v39 = vadd.f32 %v2924_v54, %v3794_v47  ;;  %v1967_v43 = vpop.f32.mrb[49].mxu0  ;;  %v2138_v61 = vmul.f32 %v3069_v33, %v2136_v52 }
 0x3c1   : > { %v3073_v44 = vpop.eup %3072  ;;  %v1968_v53 = vadd.f32 %v3794_v47, %v1967_v43  ;;  %v2925_v18 = vpop.f32.mrb[50].mxu0  ;;  %v2104_v4 = vmul.f32 %v3071_v37, %v2102_v10 }
 0x3c2   : > { %v3075_v46 = vpop.eup %3074  ;;  %v2651_v23 = vmul.f32 -1.442695, %v1976_v39  ;;  %v1979_v63 = vadd.f32 %v2925_v18, %v3794_v47  ;;  %v1970_v19 = vpop.f32.mrb[51].mxu0  ;;  %v2155_v1 = vmul.f32 %v3073_v44, %v2153_v22 }
 0x3c3   : > { %v3077_v13 = vpop.eup %3076  ;;  %v2121_v31 = vmul.f32 %v3075_v46, %v2119_v28  ;;  %v2649_v17 = vmul.f32 -1.442695, %v1968_v53  ;;  %v1971_v57 = vadd.f32 %v3794_v47, %v1970_v19  ;;  %v2221_v37 = vpop.permute.xlu1 %2220 }
 0x3c4   : > { %v3079_v60 = vpop.eup %3078  ;;  %v2052_v11 = vadd.f32 1.0, %v3077_v13  ;;  %3084 = vpow2.f32 %v2651_v23  ;;  %v2652_v3 = vmul.f32 -1.442695, %v1979_v63 }
 0x3c5   : > { %v3081_v34 = vpop.eup %3080  ;;  %v2122_v30 = vadd.f32 %v2121_v31, %v2104_v4  ;;  %v2050_v7 = vadd.f32 1.0, %v3079_v60  ;;  %3086 = vpow2.f32 %v2649_v17  ;;  %v2650_v62 = vmul.f32 -1.442695, %v1971_v57 }
 0x3c6   : > { %v3083_v50 = vpop.eup %3082  ;;  %3088 = vrcp.f32 %v2052_v11  ;;  %v2053_v40 = vadd.f32 1.0, %v3081_v34 }
 0x3c7   : > { %v2139_v38 = vadd.f32 %v2138_v61, %v2122_v30  ;;  %3090 = vrcp.f32 %v2050_v7  ;;  %v2051_v32 = vadd.f32 1.0, %v3083_v50  ;;  %v2928_v0 = vpop.f32.mrb[52].mxu0  ;;  %v2255_v57 = vpop.permute.xlu1 %2254 }
 0x3c8   : > { %3092 = vrcp.f32 %v2053_v40  ;;  %v1992_v51 = vadd.f32 %v2928_v0, %v3794_v47  ;;  %v1983_v9 = vpop.f32.mrb[53].mxu0 }
 0x3c9   : > { %v2156_v42 = vadd.f32 %v2155_v1, %v2139_v38  ;;  %3094 = vrcp.f32 %v2051_v32  ;;  %v1984_v35 = vadd.f32 %v3794_v47, %v1983_v9  ;;  %v2929_v25 = vpop.f32.mrb[54].mxu0 }
 0x3ca   : > { %3096 = vpow2.f32 %v2652_v3  ;;  %v2655_v24 = vmul.f32 -1.442695, %v1992_v51  ;;  %v1995_v27 = vadd.f32 %v2929_v25, %v3794_v47  ;;  %v1986_v8 = vpop.f32.mrb[55].mxu0 }
 0x3cb   : > { %3098 = vpow2.f32 %v2650_v62  ;;  %v2653_v29 = vmul.f32 -1.442695, %v1984_v35  ;;  %v1987_v36 = vadd.f32 %v3794_v47, %v1986_v8  ;;  %v2204_v47 = vpop.permute.xlu0 %2203  ;;  %v2289_v50 = vpop.permute.xlu1 %2288 }
 0x3cc   : > { %v2656_v12 = vmul.f32 -1.442695, %v1995_v27 }
 0x3cd   : > { %3100 = vpow2.f32 %v2653_v29  ;;  %v2654_v49 = vmul.f32 -1.442695, %v1987_v36 }
 0x3ce   : > { %v3085_v15 = vpop.eup %3084  ;;  %3102 = vpow2.f32 %v2655_v24 }
 0x3cf   : > { %v3087_v6 = vpop.eup %3086  ;;  %3104 = vpow2.f32 %v2654_v49  ;;  %v2056_v16 = vadd.f32 1.0, %v3085_v15  ;;  %v2238_v19 = vpop.permute.xlu0 %2237 }
 0x3d0   : > { %v3089_v20 = vpop.eup %3088  ;;  %v2054_v26 = vadd.f32 1.0, %v3087_v6  ;;  %3106 = vpow2.f32 %v2656_v12  ;;  %v2323_v35 = vpop.permute.xlu1 %2322 }
 0x3d1   : > { %v3091_v48 = vpop.eup %3090  ;;  %v2206_v39 = vmul.f32 %v3089_v20, %v2204_v47  ;;  %v781_v20 = vld [vmem:[%s722_s30] sm:$0xff] }
 0x3d2   : > { %v3093_v56 = vpop.eup %3092  ;;  %v2172_v21 = vmul.f32 %v3091_v48, %v2170_v14  ;;  %3108 = vrcp.f32 %v2054_v26 }
 0x3d3   : > { %v3095_v59 = vpop.eup %3094  ;;  %3110 = vrcp.f32 %v2056_v16  ;;  %v2223_v46 = vmul.f32 %v3093_v56, %v2221_v37  ;;  %v2272_v61 = vpop.permute.xlu0 %2271  ;;  %v3129_v56 = vld [vmem:[%s3287_s13] sm:$0x1] }
 0x3d4   : > { %v3097_v2 = vpop.eup %3096  ;;  %v2173_v10 = vadd.f32 %v2172_v21, %v2156_v42  ;;  %v2189_v33 = vmul.f32 %v3095_v59, %v2187_v5  ;;  %v2357_v15 = vpop.permute.xlu1 %2356  ;;  %v2412_v21 = vmul.f32 %v3129_v56, %v3129_v56 }
 0x3d5   : > { %v3099_v52 = vpop.eup %3098  ;;  %v2057_v54 = vadd.f32 1.0, %v3097_v2 }
 0x3d6   : > { %v2190_v43 = vadd.f32 %v2189_v33, %v2173_v10  ;;  %v2055_v44 = vadd.f32 1.0, %v3099_v52  ;;  %v2413_v16 = vsel %vm2401_vm6, %v2412_v21, 0.0 }
 0x3d7   : > { %v3101_v53 = vpop.eup %3100  ;;  %v2306_v0 = vpop.permute.xlu0 %2305 }
 0x3d8   : > { %v3103_v18 = vpop.eup %3102  ;;  %v2207_v28 = vadd.f32 %v2206_v39, %v2190_v43  ;;  %3112 = vrcp.f32 %v2055_v44  ;;  %v2058_v23 = vadd.f32 1.0, %v3101_v53  ;;  %v2424_v53 = vmul.f32 0.01, %v3788_v58 }
 0x3d9   : > { %v3105_v63 = vpop.eup %3104  ;;  %3114 = vrcp.f32 %v2057_v54  ;;  %v2060_v60 = vadd.f32 1.0, %v3103_v18  ;;  %v2428_v58 = vand.u32 127, %v913_v55 }
 0x3da   : > { %v2224_v13 = vadd.f32 %v2223_v46, %v2207_v28  ;;  %3116 = vrcp.f32 %v2058_v23  ;;  %v2059_v4 = vadd.f32 1.0, %v3105_v63  ;;  %v3107_v31 = vpop.eup %3106  ;;  %v2404_v28 = vpop.xlane.xlu1 %2403 }
 0x3db   : > { %v2061_v34 = vadd.f32 1.0, %v3107_v31  ;;  %v2340_v36 = vpop.permute.xlu0 %2339  ;;  %vm2407_vm7 = vcmp.eq.f32.partialorder %v2404_v28, inf  ;;  %vm2409_vm9 = vcmp.eq.f32.partialorder %v2404_v28, 0.0  ;;  %vm2436_vm11 = vcmp.eq.s32.totalorder %v2428_v58, 1 }
 0x3dc   : > { %v3109_v17 = vpop.eup %3108  ;;  %3118 = vrcp.f32 %v2059_v4  ;;  %vm2429_vm12 = vcmp.eq.s32.totalorder %v2428_v58, 0  ;;  %vm2444_vm13 = vcmp.eq.s32.totalorder %v2428_v58, 2  ;;  %vm2447_vm14 = vcmp.eq.s32.totalorder %v2428_v58, 3 }
 0x3dd   : > { %v2240_v11 = vmul.f32 %v3109_v17, %v2238_v19  ;;  %3120 = vrcp.f32 %v2060_v60  ;;  %v3111_v30 = vpop.eup %3110 }
 0x3de   : > { %3122 = vrcp.f32 %v2061_v34  ;;  %v2274_v38 = vmul.f32 %v3111_v30, %v2272_v61  ;;  %v2440_v60 = vpop.permute.xlu1 %2439 }
 0x3df   : > { %v2241_v22 = vadd.f32 %v2240_v11, %v2224_v13  ;;  %3124 = vrsqrt.f32 %v2404_v28  ;;  %v2410_v13 = vand.u32 2147483648, %v2404_v28 }
 0x3e2   : > { %v3113_v7 = vpop.eup %3112 }
 0x3e3   : > { %v3115_v1 = vpop.eup %3114  ;;  %v2257_v40 = vmul.f32 %v3113_v7, %v2255_v57 }
 0x3e4   : > { %v3117_v3 = vpop.eup %3116  ;;  %v2291_v9 = vmul.f32 %v3115_v1, %v2289_v50 }
 0x3e5   : > { %v2258_v32 = vadd.f32 %v2257_v40, %v2241_v22  ;;  %v2308_v42 = vmul.f32 %v3117_v3, %v2306_v0  ;;  %v2442_v22 = vsel %vm2436_vm11, %v2440_v60, 0.0 }
 0x3e6   : > { %v3119_v62 = vpop.eup %3118 }
 0x3e7   : > { %v2275_v51 = vadd.f32 %v2274_v38, %v2258_v32  ;;  %v2325_v24 = vmul.f32 %v3119_v62, %v2323_v35  ;;  %v3121_v27 = vpop.eup %3120 }
 0x3e8   : > { %v3123_v29 = vpop.eup %3122  ;;  %v2342_v49 = vmul.f32 %v3121_v27, %v2340_v36 }
 0x3e9   : > { %v2292_v25 = vadd.f32 %v2291_v9, %v2275_v51  ;;  %v2359_v6 = vmul.f32 %v3123_v29, %v2357_v15 }
 0x3eb   : > { %v2309_v8 = vadd.f32 %v2308_v42, %v2292_v25 }
 0x3ed   : > { %v2326_v12 = vadd.f32 %v2325_v24, %v2309_v8 }
 0x3ef   : > { %v2343_v14 = vadd.f32 %v2342_v49, %v2326_v12 }
 0x3f1   : > { %v2360_v5 = vadd.f32 %v2359_v6, %v2343_v14 }
 0x3f3   : > { %v2371_v26 = vsub.f32 %v2360_v5, %v781_v20 }
 0x3f5   : > { %v2372_v48 = vmul.f32 %v2371_v26, %v2371_v26 }
 0x3f7   : > { %v2373_v59 = vsel %vm917_vm4, %v2372_v48, 0.0 }
 0x3f8   : > { %2374 = vadd.xlane.f32.xlu0 %v2373_v59 }
 0x3fc   : > { %2414 = vadd.xlane.f32.xlu0 %v2413_v16 }
 0x485   : > { %v2375_v2 = vpop.xlane.xlu0 %2374 }
 0x486   : > { %v2376_v47 = vmul.f32 %v2375_v2, %v3777_v41  ;;  %v3125_v41 = vpop.eup %3124 }
 0x487   : > { %v2406_v63 = vmul.f32 %v3125_v41, %v2404_v28 }
 0x488   : > { %v2377_v10 = vsel %vm2362_vm5, %v2376_v47, 0.0 }
 0x489   : > { %v2378_v33 = vrot.slane %v2377_v10, 4  ;;  %v2415_v46 = vpop.xlane.xlu0 %2414  ;;  %v2408_v31 = vsel %vm2407_vm7, %v2404_v28, %v2406_v63 }
 0x48a   : > { %3126 = vrsqrt.f32 %v2415_v46  ;;  %vm2418_vm8 = vcmp.eq.f32.partialorder %v2415_v46, inf  ;;  %v2421_v4 = vand.u32 2147483648, %v2415_v46  ;;  %vm2420_vm10 = vcmp.eq.f32.partialorder %v2415_v46, 0.0 }
 0x48b   : > { %v2379_v52 = vadd.f32 %v2378_v33, %v2377_v10  ;;  %v2411_v17 = vsel %vm2409_vm9, %v2410_v13, %v2408_v31 }
 0x48d   : > { %v2380_v54 = vrot.slane %v2379_v52, 2 }
 0x48f   : > { %v2381_v37 = vadd.f32 %v2380_v54, %v2379_v52 }
 0x491   : > { %v2382_v39 = vrot.slane %v2381_v37, 1 }
 0x493   : > { %v2383_v43 = vadd.f32 %v2382_v39, %v2381_v37 }
 0x494   : > { %v3127_v23 = vpop.eup %3126 }
 0x495   : > { %v2385_v44 = vmul.f32 %v3785_v45, %v2383_v43  ;;  %v2417_v19 = vmul.f32 %v3127_v23, %v2415_v46 }
 0x497   : > { %2432 = vperm.xlu0 %2958, %v2385_v44   ;;  %v2425_v18 = vadd.f32 %v2424_v53, %v2385_v44  ;;  %v2419_v45 = vsel %vm2418_vm8, %v2415_v46, %v2417_v19 }
 0x498   : > { %v2422_v57 = vsel %vm2420_vm10, %v2421_v4, %v2419_v45 }
 0x499   : > { %2450 = vperm.xlu1 %2959, %v2425_v18   ;;  %v2423_v11 = vadd.f32 %v2422_v57, %v2411_v17 }
 0x49b   : > { %v2445_v50 = vsel %vm2444_vm13, %v2423_v11, 0.0 }
 0x516   : > { %v2433_v34 = vpop.permute.xlu0 %2432 }
 0x517   : > { %v2435_v61 = vsel %vm2429_vm12, %v2433_v34, 0.0 }
 0x518   : > { %v2443_v30 = vadd.f32 %v2442_v22, %v2435_v61  ;;  %v2451_v7 = vpop.permute.xlu1 %2450 }
 0x519   : > { %v2453_v55 = vsel %vm2447_vm14, %v2451_v7, 0.0 }
 0x51a   : > { %v2446_v1 = vadd.f32 %v2445_v50, %v2443_v30 }
 0x51c   : > { %v2454_v40 = vadd.f32 %v2453_v55, %v2446_v1 }
 0x51e   : > { %2455 = vst [vmem:[%s729_s21] sm:$0x1] %v2454_v40 }
 0x51f PF: > { %s32_s23 = sadd.s32 1, %s3136_s23  }
 0x520   : > { %p29_p4 = scmp.ge.s32.totalorder %s32_s23, 4  }
 0x522   :  { %31 = sbr.rel (!%p29_p4) target bundleno = 6 (0x6), region = 148 }

</bundles_post_ra>
